<compile_context>
chip_gen: v7x
topology: tpu7x:2x2x1
jax: 0.10.0
libtpu: 0.0.40
codegen_flags: <defaults>
</compile_context>

<pallas_src>
import jax
import jax.numpy as jnp
from jax.experimental import pallas as pl
from jax.experimental.pallas import tpu as pltpu


def _sigmoid(x):
    # Single-EUP form of the logistic: sigmoid(x) = 0.5 * tanh(0.5*x) + 0.5.
    return 0.5 * jnp.tanh(0.5 * x) + 0.5


def vae_kernel(x_ref, we_ref, be_ref, wms_ref, bms_ref, wd_ref, bd_ref, eps_ref,
               out_ref, latent_ref):
    """Whole VAE forward for one batch tile, fully resident in VMEM.

    Matmuls take bf16 operands (MXU, f32 accumulation); all elementwise math
    (sigmoid, exp, reparameterization) runs in f32.
    """
    k3 = eps_ref.shape[-1]

    x = x_ref[...]  # bf16 [tb, D]

    # encoder: h = sigmoid(x @ We + be)
    h = _sigmoid(
        jnp.dot(x, we_ref[...], preferred_element_type=jnp.float32) + be_ref[...]
    )

    # fused latent heads: [mu | log_sigma] = h @ [Wmu | Wls] + [bmu | bls]
    ms = (
        jnp.dot(h.astype(jnp.bfloat16), wms_ref[...],
                preferred_element_type=jnp.float32)
        + bms_ref[...]
    )
    mu = ms[:, :k3]
    sigma = jnp.exp(ms[:, k3:])          # sigma = exp(log_sigma)

    # reparameterized sample z = mu + sigma * eps
    z = mu + sigma * eps_ref[...]

    # decoder: out = sigmoid(z @ Wd + bd)
    out = _sigmoid(
        jnp.dot(z.astype(jnp.bfloat16), wd_ref[...],
                preferred_element_type=jnp.float32)
        + bd_ref[...]
    )

    out_ref[...] = out
    # lane-dense latent writeback: one [tb, 2*k3] stream = [mu | sigma]
    latent_ref[...] = jnp.concatenate([mu, sigma], axis=-1)


def vae_forward(x, params, eps, *, tb=256):
    """x: [B, D] float32.  Returns (reconstruction [B, D], mu [B, k3], sigma [B, k3])."""
    B, D = x.shape
    k2 = params["We"].shape[1]
    k3 = params["Wms"].shape[1] // 2

    tb = min(tb, B)
    assert B % tb == 0, "batch must be divisible by the batch tile"

    # bf16 operands for the MXU; eps stays f32 (elementwise only).
    x_bf16 = x.astype(jnp.bfloat16)
    eps = eps.astype(jnp.float32)

    xmap = lambda i: (i, 0)     # batch-tiled streams
    wmap = lambda i: (0, 0)     # loop-invariant weights (fetched once)

    grid = (B // tb,)
    out_shapes = (
        jax.ShapeDtypeStruct((B, D), jnp.float32),          # reconstruction
        jax.ShapeDtypeStruct((B, 2 * k3), jnp.float32),     # [mu | sigma]
    )
    in_specs = [
        pl.BlockSpec((tb, D), xmap),            # x
        pl.BlockSpec((D, k2), wmap),            # We
        pl.BlockSpec((1, k2), wmap),            # be
        pl.BlockSpec((k2, 2 * k3), wmap),       # [Wmu | Wls]
        pl.BlockSpec((1, 2 * k3), wmap),        # [bmu | bls]
        pl.BlockSpec((k3, D), wmap),            # Wd
        pl.BlockSpec((1, D), wmap),             # bd
        pl.BlockSpec((tb, k3), xmap),           # eps
    ]
    out_specs = (
        pl.BlockSpec((tb, D), xmap),
        pl.BlockSpec((tb, 2 * k3), xmap),
    )

    # Advisory cost for XLA scheduling around the custom call.
    flops = 2 * B * (D * k2 + k2 * 2 * k3 + k3 * D)
    transcendentals = B * (k2 + k3 + D)
    bytes_accessed = (
        B * D * 2                                   # x (bf16)
        + B * k3 * 4                                # eps (f32)
        + (D * k2 + k2 * 2 * k3 + k3 * D) * 2       # weights (bf16)
        + (k2 + 2 * k3 + D) * 4                     # biases (f32)
        + B * D * 4 + B * 2 * k3 * 4                # outputs (f32)
    )

    fn = pl.pallas_call(
        vae_kernel,
        out_shape=out_shapes,
        grid=grid,
        in_specs=in_specs,
        out_specs=out_specs,
        compiler_params=pltpu.CompilerParams(
            dimension_semantics=("parallel",),      # shards the batch axis across TCs on v7x
        ),
        cost_estimate=pl.CostEstimate(
            flops=flops,
            transcendentals=transcendentals,
            bytes_accessed=bytes_accessed,
        ),
    )
    out, latent = fn(
        x_bf16,
        params["We"], params["be"],
        params["Wms"], params["bms"],
        params["Wd"], params["bd"],
        eps,
    )
    mu = latent[:, :k3]       # corresponds to self.z_mean
    sigma = latent[:, k3:]    # corresponds to self.z_sigma
    return out, mu, sigma


def init_params(key, D, k2, k3):
    """Deterministic synthetic weights (fan-in scaled normals).

    Matmul weights stored in bf16 (MXU operands); biases in f32.
    The mu / log_sigma heads are stored pre-fused as [Wmu | Wls], [bmu | bls].
    """
    ks = jax.random.split(key, 6)

    def w(k, shape, fan_in, dtype):
        return (jax.random.normal(k, shape, jnp.float32)
                / jnp.sqrt(fan_in)).astype(dtype)

    return {
        "We":  w(ks[0], (D, k2), D, jnp.bfloat16),
        "be":  w(ks[1], (1, k2), k2, jnp.float32),
        "Wms": w(ks[2], (k2, 2 * k3), k2, jnp.bfloat16),   # [Wmu | Wls]
        "bms": w(ks[3], (1, 2 * k3), k3, jnp.float32),     # [bmu | bls]
        "Wd":  w(ks[4], (k3, D), k3, jnp.bfloat16),
        "bd":  w(ks[5], (1, D), D, jnp.float32),
    }


def vae_ref(x, params, eps):
    """Pure-JAX reference (same bf16-operand / f32-accumulate math)."""
    k3 = params["Wms"].shape[1] // 2
    xb = x.astype(jnp.bfloat16)
    h = jax.nn.sigmoid(
        jnp.dot(xb, params["We"], preferred_element_type=jnp.float32) + params["be"]
    )
    ms = (
        jnp.dot(h.astype(jnp.bfloat16), params["Wms"],
                preferred_element_type=jnp.float32)
        + params["bms"]
    )
    mu, log_sigma = ms[:, :k3], ms[:, k3:]
    sigma = jnp.exp(log_sigma)
    z = mu + sigma * eps
    out = jax.nn.sigmoid(
        jnp.dot(z.astype(jnp.bfloat16), params["Wd"],
                preferred_element_type=jnp.float32)
        + params["bd"]
    )
    return out, mu, sigma


if __name__ == "__main__":
    # Small-but-MXU-meaningful shapes: B=512 rows split into two tb=256 tiles.
    B, D, K2, K3 = 512, 256, 64, 32
    key = jax.random.PRNGKey(0)
    kx, kp, keps = jax.random.split(key, 3)

    x = jax.random.uniform(kx, (B, D), jnp.float32)        # "state" input
    params = init_params(kp, D, K2, K3)
    # deterministic stand-in for np.random.normal(0, 1, sigma.size())
    eps = jax.random.normal(keps, (B, K3), jnp.float32)

    out, mu, sigma = vae_forward(x, params, eps)
    jax.block_until_ready((out, mu, sigma))

    ref_out, ref_mu, ref_sigma = vae_ref(x, params, eps)
    assert jnp.allclose(out, ref_out, atol=2e-2, rtol=2e-2), "reconstruction mismatch"
    assert jnp.allclose(mu, ref_mu, atol=2e-2, rtol=2e-2), "mu mismatch"
    assert jnp.allclose(sigma, ref_sigma, atol=2e-2, rtol=2e-2), "sigma mismatch"

    print("KERNEL_OK")
</pallas_src>

<mosaic_0001>
module attributes {stable_mosaic.version = 11 : i64} {
  func.func @vae_kernel(%arg0: i32, %arg1: memref<256x256xbf16, #tpu.memory_space<vmem>>, %arg2: memref<256x64xbf16, #tpu.memory_space<vmem>>, %arg3: memref<1x64xf32, #tpu.memory_space<vmem>>, %arg4: memref<64x64xbf16, #tpu.memory_space<vmem>>, %arg5: memref<1x64xf32, #tpu.memory_space<vmem>>, %arg6: memref<32x256xbf16, #tpu.memory_space<vmem>>, %arg7: memref<1x256xf32, #tpu.memory_space<vmem>>, %arg8: memref<256x32xf32, #tpu.memory_space<vmem>>, %arg9: memref<256x256xf32, #tpu.memory_space<vmem>>, %arg10: memref<256x64xf32, #tpu.memory_space<vmem>>) attributes {dimension_semantics = [#tpu.dimension_semantics<parallel>], iteration_bounds = array<i64: 2>, scalar_prefetch = 0 : i64, scratch_operands = 0 : i64, tpu.core_type = #tpu.core_type<tc>, window_params = [{transform_indices = @transform_0, window_bounds = array<i64: 256, 256>}, {pipeline_mode = #tpu.pipeline_mode<synchronous>, transform_indices = @transform_1, window_bounds = array<i64: 256, 64>}, {pipeline_mode = #tpu.pipeline_mode<synchronous>, transform_indices = @transform_2, window_bounds = array<i64: 1, 64>}, {pipeline_mode = #tpu.pipeline_mode<synchronous>, transform_indices = @transform_3, window_bounds = array<i64: 64, 64>}, {pipeline_mode = #tpu.pipeline_mode<synchronous>, transform_indices = @transform_4, window_bounds = array<i64: 1, 64>}, {pipeline_mode = #tpu.pipeline_mode<synchronous>, transform_indices = @transform_5, window_bounds = array<i64: 32, 256>}, {pipeline_mode = #tpu.pipeline_mode<synchronous>, transform_indices = @transform_6, window_bounds = array<i64: 1, 256>}, {transform_indices = @transform_7, window_bounds = array<i64: 256, 32>}, {transform_indices = @transform_8, window_bounds = array<i64: 256, 256>}, {transform_indices = @transform_9, window_bounds = array<i64: 256, 64>}]} {
    %c0 = arith.constant 0 : index
    %c0_0 = arith.constant 0 : index
    %0 = vector.load %arg1[%c0, %c0_0] : memref<256x256xbf16, #tpu.memory_space<vmem>>, vector<256x256xbf16>
    %c0_1 = arith.constant 0 : index
    %c0_2 = arith.constant 0 : index
    %1 = vector.load %arg2[%c0_1, %c0_2] : memref<256x64xbf16, #tpu.memory_space<vmem>>, vector<256x64xbf16>
    %cst = arith.constant dense<0.000000e+00> : vector<256x64xf32>
    %2 = tpu.matmul %0, %1, %cst {dimension_numbers = #tpu.dot_dimension_numbers<[1], [0], [0], [1], [0, 0, 1, 1], [], []>} : vector<256x256xbf16>, vector<256x64xbf16>, vector<256x64xf32> -> vector<256x64xf32>
    %c0_3 = arith.constant 0 : index
    %c0_4 = arith.constant 0 : index
    %3 = vector.load %arg3[%c0_3, %c0_4] : memref<1x64xf32, #tpu.memory_space<vmem>>, vector<1x64xf32>
    %4 = vector.broadcast %3 : vector<1x64xf32> to vector<256x64xf32>
    %5 = arith.addf %2, %4 : vector<256x64xf32>
    %cst_5 = arith.constant 5.000000e-01 : f32
    %6 = vector.broadcast %cst_5 : f32 to vector<256x64xf32>
    %7 = arith.mulf %6, %5 : vector<256x64xf32>
    %8 = math.tanh %7 : vector<256x64xf32>
    %cst_6 = arith.constant 5.000000e-01 : f32
    %9 = vector.broadcast %cst_6 : f32 to vector<256x64xf32>
    %10 = arith.mulf %9, %8 : vector<256x64xf32>
    %cst_7 = arith.constant 5.000000e-01 : f32
    %11 = vector.broadcast %cst_7 : f32 to vector<256x64xf32>
    %12 = arith.addf %10, %11 : vector<256x64xf32>
    %13 = arith.truncf %12 : vector<256x64xf32> to vector<256x64xbf16>
    %c0_8 = arith.constant 0 : index
    %c0_9 = arith.constant 0 : index
    %14 = vector.load %arg4[%c0_8, %c0_9] : memref<64x64xbf16, #tpu.memory_space<vmem>>, vector<64x64xbf16>
    %cst_10 = arith.constant dense<0.000000e+00> : vector<256x64xf32>
    %15 = tpu.matmul %13, %14, %cst_10 {dimension_numbers = #tpu.dot_dimension_numbers<[1], [0], [0], [1], [0, 0, 1, 1], [], []>} : vector<256x64xbf16>, vector<64x64xbf16>, vector<256x64xf32> -> vector<256x64xf32>
    %c0_11 = arith.constant 0 : index
    %c0_12 = arith.constant 0 : index
    %16 = vector.load %arg5[%c0_11, %c0_12] : memref<1x64xf32, #tpu.memory_space<vmem>>, vector<1x64xf32>
    %17 = vector.broadcast %16 : vector<1x64xf32> to vector<256x64xf32>
    %18 = arith.addf %15, %17 : vector<256x64xf32>
    %19 = vector.extract_strided_slice %18 {offsets = [0, 0], sizes = [256, 32], strides = [1, 1]} : vector<256x64xf32> to vector<256x32xf32>
    %20 = vector.extract_strided_slice %18 {offsets = [0, 32], sizes = [256, 32], strides = [1, 1]} : vector<256x64xf32> to vector<256x32xf32>
    %21 = math.exp %20 : vector<256x32xf32>
    %c0_13 = arith.constant 0 : index
    %c0_14 = arith.constant 0 : index
    %22 = vector.load %arg8[%c0_13, %c0_14] : memref<256x32xf32, #tpu.memory_space<vmem>>, vector<256x32xf32>
    %23 = arith.mulf %21, %22 : vector<256x32xf32>
    %24 = arith.addf %19, %23 : vector<256x32xf32>
    %25 = arith.truncf %24 : vector<256x32xf32> to vector<256x32xbf16>
    %c0_15 = arith.constant 0 : index
    %c0_16 = arith.constant 0 : index
    %26 = vector.load %arg6[%c0_15, %c0_16] : memref<32x256xbf16, #tpu.memory_space<vmem>>, vector<32x256xbf16>
    %cst_17 = arith.constant dense<0.000000e+00> : vector<256x256xf32>
    %27 = tpu.matmul %25, %26, %cst_17 {dimension_numbers = #tpu.dot_dimension_numbers<[1], [0], [0], [1], [0, 0, 1, 1], [], []>} : vector<256x32xbf16>, vector<32x256xbf16>, vector<256x256xf32> -> vector<256x256xf32>
    %c0_18 = arith.constant 0 : index
    %c0_19 = arith.constant 0 : index
    %28 = vector.load %arg7[%c0_18, %c0_19] : memref<1x256xf32, #tpu.memory_space<vmem>>, vector<1x256xf32>
    %29 = vector.broadcast %28 : vector<1x256xf32> to vector<256x256xf32>
    %30 = arith.addf %27, %29 : vector<256x256xf32>
    %cst_20 = arith.constant 5.000000e-01 : f32
    %31 = vector.broadcast %cst_20 : f32 to vector<256x256xf32>
    %32 = arith.mulf %31, %30 : vector<256x256xf32>
    %33 = math.tanh %32 : vector<256x256xf32>
    %cst_21 = arith.constant 5.000000e-01 : f32
    %34 = vector.broadcast %cst_21 : f32 to vector<256x256xf32>
    %35 = arith.mulf %34, %33 : vector<256x256xf32>
    %cst_22 = arith.constant 5.000000e-01 : f32
    %36 = vector.broadcast %cst_22 : f32 to vector<256x256xf32>
    %37 = arith.addf %35, %36 : vector<256x256xf32>
    %c0_23 = arith.constant 0 : index
    %c0_24 = arith.constant 0 : index
    %38 = vector.load %arg9[%c0_23, %c0_24] : memref<256x256xf32, #tpu.memory_space<vmem>>, vector<256x256xf32>
    tpu.vector_store %arg9[%c0_23, %c0_24], %37 {strides = array<i32>} : memref<256x256xf32, #tpu.memory_space<vmem>>, vector<256x256xf32>,
    %39 = tpu.concatenate %19, %21 in 1 : vector<256x32xf32>, vector<256x32xf32> -> vector<256x64xf32>
    %c0_25 = arith.constant 0 : index
    %c0_26 = arith.constant 0 : index
    %40 = vector.load %arg10[%c0_25, %c0_26] : memref<256x64xf32, #tpu.memory_space<vmem>>, vector<256x64xf32>
    tpu.vector_store %arg10[%c0_25, %c0_26], %39 {strides = array<i32>} : memref<256x64xf32, #tpu.memory_space<vmem>>, vector<256x64xf32>,
    return
  }
  func.func @transform_0(%arg0: i32) -> (i32, i32) {
    %c0_i32 = arith.constant 0 : i32
    %c0_i32_0 = arith.constant 0 : i32
    return %arg0, %c0_i32 : i32, i32
  }
  func.func @transform_1(%arg0: i32) -> (i32, i32) {
    %c0_i32 = arith.constant 0 : i32
    %c0_i32_0 = arith.constant 0 : i32
    %c0_i32_1 = arith.constant 0 : i32
    return %c0_i32, %c0_i32_0 : i32, i32
  }
  func.func @transform_2(%arg0: i32) -> (i32, i32) {
    %c0_i32 = arith.constant 0 : i32
    %c0_i32_0 = arith.constant 0 : i32
    %c0_i32_1 = arith.constant 0 : i32
    return %c0_i32, %c0_i32_0 : i32, i32
  }
  func.func @transform_3(%arg0: i32) -> (i32, i32) {
    %c0_i32 = arith.constant 0 : i32
    %c0_i32_0 = arith.constant 0 : i32
    %c0_i32_1 = arith.constant 0 : i32
    return %c0_i32, %c0_i32_0 : i32, i32
  }
  func.func @transform_4(%arg0: i32) -> (i32, i32) {
    %c0_i32 = arith.constant 0 : i32
    %c0_i32_0 = arith.constant 0 : i32
    %c0_i32_1 = arith.constant 0 : i32
    return %c0_i32, %c0_i32_0 : i32, i32
  }
  func.func @transform_5(%arg0: i32) -> (i32, i32) {
    %c0_i32 = arith.constant 0 : i32
    %c0_i32_0 = arith.constant 0 : i32
    %c0_i32_1 = arith.constant 0 : i32
    return %c0_i32, %c0_i32_0 : i32, i32
  }
  func.func @transform_6(%arg0: i32) -> (i32, i32) {
    %c0_i32 = arith.constant 0 : i32
    %c0_i32_0 = arith.constant 0 : i32
    %c0_i32_1 = arith.constant 0 : i32
    return %c0_i32, %c0_i32_0 : i32, i32
  }
  func.func @transform_7(%arg0: i32) -> (i32, i32) {
    %c0_i32 = arith.constant 0 : i32
    %c0_i32_0 = arith.constant 0 : i32
    return %arg0, %c0_i32 : i32, i32
  }
  func.func @transform_8(%arg0: i32) -> (i32, i32) {
    %c0_i32 = arith.constant 0 : i32
    %c0_i32_0 = arith.constant 0 : i32
    return %arg0, %c0_i32 : i32, i32
  }
  func.func @transform_9(%arg0: i32) -> (i32, i32) {
    %c0_i32 = arith.constant 0 : i32
    %c0_i32_0 = arith.constant 0 : i32
    return %arg0, %c0_i32 : i32, i32
  }
}

</mosaic_0001>

<bundles_post_ra>
// kernel: tpu_custom_call.1
= control target key start
LH: loop header
LB: loop body
LE: loop exit
PB: predicated region body
PF: predicated region fallthrough
CT: control target
= control target key end

     0   :  { %15 = vsyncpa [#allocation3], 0  ;;  %s4160_s0 = inlined_call_operand.vmem [shape: bf16[512,256], index: 0, kind: input, shape index: {}]   ;;  %s4161_s1 = inlined_call_operand.vmem [shape: bf16[256,64], index: 1, kind: input, shape index: {}]   ;;  %s4162_s2 = inlined_call_operand.vmem [shape: f32[1,64], index: 2, kind: input, shape index: {}]   ;;  %s4163_s3 = inlined_call_operand.vmem [shape: bf16[64,64], index: 3, kind: input, shape index: {}]   ;;  %s4164_s4 = inlined_call_operand.vmem [shape: f32[1,64], index: 4, kind: input, shape index: {}]   ;;  %s4165_s5 = inlined_call_operand.vmem [shape: bf16[32,256], index: 5, kind: input, shape index: {}]   ;;  %s4166_s6 = inlined_call_operand.vmem [shape: f32[1,256], index: 6, kind: input, shape index: {}]   ;;  %s4167_s7 = inlined_call_operand.vmem [shape: f32[512,32], index: 7, kind: input, shape index: {}]   ;;  %s4168_s8 = inlined_call_operand.hbm [shape: f32[512,256], index: 8, kind: output, shape index: {0}]   ;;  %s4169_s9 = inlined_call_operand.vmem [shape: f32[512,64], index: 9, kind: output, shape index: {1}]  }
   0x1   :  { %17 = vsyncpa [#allocation3 + $0x1], 0  ;;  %s3257_s30 = smov 0   ;;  %s3259_s10 = smov 0  }
   0x2   :  { %s3261_s11 = smov 0   ;;  %s3263_s12 = smov 0  }
   0x3 LB: > { %s3278_s13 = sadd.s32 4294967295, %s3199_s12   ;;  %s2472_s14 = sadd.s32 4294967294, %s3199_s12   ;;  %s3199_s12 = sphi %s3263_s12, %s4175_s12   ;;  %s3195_s11 = sphi %s3261_s11, %s4174_s11   ;;  %s3191_s10 = sphi %s3259_s10, %s4173_s10   ;;  %s3187_s30 = sphi %s3257_s30, %s4172_s30  }
   0x4   : > { %s3282_s15 = sadd.s32 1, %s3199_s12   ;;  %s208_s16 = sadd.s32 1, %s3195_s11 }
   0x5   : > { %s205_s17 = ssub.s32 %s3199_s12, %s3282_s15  ;;  %p218_p0 = scmp.ne.s32.totalorder %s3195_s11, %s3191_s10 }
   0x6   : > { %p206_p1 = scmp.eq.s32.totalorder %s205_s17, 0  ;;  %p219_p2 = scmp.eq.s32.totalorder %s3278_s13, 1 }
   0x7   : > { %p224_p3 = scmp.ne.s32.totalorder %s3191_s10, %s3187_s30  ;;  %p225_p4 = scmp.eq.s32.totalorder %s2472_s14, 1 }
   0x8   : > { %s3293_s18 = scalar_select %p206_p1, %s3195_s11, %s208_s16  }
   0x9   : > { %p3295_p5 = por %p219_p2, %p218_p0  ;;  %p3299_p6 = por %p225_p4, %p224_p3 }
   0xa   : > { %p2475_p7 = scmp.ge.s32.totalorder %s3199_s12, 1  ;;  %p306_p8 = scmp.lt.s32.totalorder %s3199_s12, 3 }
   0xc   : > { %p307_p9 = pnand %p2475_p7, %p306_p8 }
   0xd   : > { %v2807_v0 = vld [vmem:[%s4161_s1 + $0x40] sm:$0xff] (!%p307_p9)   ;;  %s2477_s23 = sshll.u32 (!%p307_p9), %s3278_s13, 5  ;;  %v2809_v2 = vld [vmem:[%s4161_s1 + $0x48] sm:$0xff] (!%p307_p9)   ;;  %v2811_v4 = vld [vmem:[%s4161_s1 + $0x50] sm:$0xff] (!%p307_p9)   ;;  %s3201_s26 = smov (!%p307_p9), 32   ;;  %vm1045_vm0 = vcmask (!%p307_p9), 523264  }
   0xe   : > { %310 = sbr.rel (%p307_p9) target bundleno = 1069 (0x42d), region = 52  ;;  %v2808_v1 = vld [vmem:[%s4161_s1] sm:$0xff] (!%p307_p9)   ;;  %2583 = vmatprep.subr.bf16.mxu0 (!%p307_p9), %v2807_v0  ;;  %v2810_v3 = vld [vmem:[%s4161_s1 + $0x8] sm:$0xff] (!%p307_p9)   ;;  %p354_p10 = scmp.lt.s32.totalorder (!%p307_p9), %s2477_s23, 63  ;;  %v2812_v5 = vld [vmem:[%s4161_s1 + $0x10] sm:$0xff] (!%p307_p9)   ;;  %vm1723_vm1 = vcmask (!%p307_p9), 261120  }
   0xf   : > { %2584 = vmatpush3.bf16.msra.mxu0 (!%p307_p9), %v2808_v1  ;;  %v2813_v6 = vld [vmem:[%s4161_s1 + $0x58] sm:$0xff] (!%p307_p9)   ;;  %v2815_v8 = vld [vmem:[%s4161_s1 + $0x60] sm:$0xff] (!%p307_p9)   ;;  %v2817_v10 = vld [vmem:[%s4161_s1 + $0x68] sm:$0xff] (!%p307_p9)   ;;  %s343_s22 = sand.u32 (!%p307_p9), 1, %s3191_s10  }
  0x10   : > { %2585 = vmatprep.subr.bf16.mxu0 (!%p307_p9), %v2809_v2  ;;  %v2814_v7 = vld [vmem:[%s4161_s1 + $0x18] sm:$0xff] (!%p307_p9)   ;;  %v2816_v9 = vld [vmem:[%s4161_s1 + $0x20] sm:$0xff] (!%p307_p9)   ;;  %v2818_v12 = vld [vmem:[%s4161_s1 + $0x28] sm:$0xff] (!%p307_p9)  }
  0x11   : > { %v2819_v13 = vld [vmem:[%s4161_s1 + $0x70] sm:$0xff] (!%p307_p9)   ;;  %v2821_v15 = vld [vmem:[%s4161_s1 + $0x78] sm:$0xff] (!%p307_p9)   ;;  %v2855_v19 = vld [vmem:[%s4163_s3] sm:$0xff] (!%p307_p9)  }
  0x12   : > { %v2820_v14 = vld [vmem:[%s4161_s1 + $0x30] sm:$0xff] (!%p307_p9)   ;;  %v2822_v16 = vld [vmem:[%s4161_s1 + $0x38] sm:$0xff] (!%p307_p9)   ;;  %2755 = vmatprep.subr.bf16.mxu1 (!%p307_p9), %v2855_v19  ;;  %v2868_v20 = vld [vmem:[%s4163_s3 + $0x8] sm:$0xff] (!%p307_p9)  }
  0x13   : > { %2586 = vmatpush3.bf16.msra.mxu0 (!%p307_p9), %v2810_v3  ;;  %2759 = vmatpush3.bf16.msra.mxu1 (!%p307_p9), %v2855_v19  ;;  %v2873_v23 = vld [vmem:[%s4163_s3 + $0x10] sm:$0xff] (!%p307_p9)   ;;  %v2874_v48 = vld [vmem:[%s4163_s3 + $0x18] sm:$0xff] (!%p307_p9)   ;;  %v3420_v56 = vld [vmem:[%s4162_s2] ss:$0 sm:$0xff] (!%p307_p9) }
  0x14   : > { %2587 = vmatprep.subr.bf16.mxu0 (!%p307_p9), %v2811_v4  ;;  %2756 = vmatprep.subr.bf16.mxu1 (!%p307_p9), %v2868_v20 }
  0x15   : > { %s4177_s23 = smov (!%p354_p10, %s2477_s23), 63 }
  0x16   : > { %s3330_s27 = sshll.u32 %s4177_s23, 3  ;;  %s2476_s23 = sshll.u32 %s343_s22, 9 }
  0x17   : > { %2588 = vmatpush3.bf16.msra.mxu0 %v2812_v5  ;;  %s3339_s17 = scalar_lea.vmem %s4160_s0, %s3330_s27  ;;  %2760 = vmatpush3.bf16.msra.mxu1 %v2868_v20  ;;  %s3410_s25 = scalar_lea.vmem %s4167_s7, %s3330_s27 }
  0x18   : > { %2589 = vmatprep.subr.bf16.mxu0 %v2813_v6  ;;  %v2825_v11 = vld [vmem:[%s3339_s17 + $0x4] ss:$8 sps:$4 sm:$0xff]   ;;  %v2823_v17 = vld [vmem:[%s3339_s17] ss:$8 sps:$4 sm:$0xff]   ;;  %v2826_v18 = vld [vmem:[%s3339_s17 + $0x14] ss:$8 sps:$4 sm:$0xff]   ;;  %2757 = vmatprep.subr.bf16.mxu1 %v2873_v23  ;;  %s3535_s21 = scalar_lea.vmem %s4169_s9, %s3330_s27 }
  0x19   : > { %733 = vmatprep.mubr.bf16.mxu0 %v2825_v11  ;;  %v2828_v21 = vld [vmem:[%s3339_s17 + $0x10] ss:$8 sps:$4 sm:$0xff]   ;;  %v2829_v22 = vld [vmem:[%s3339_s17 + $0x24] ss:$8 sps:$4 sm:$0xff]   ;;  %v2831_v24 = vld [vmem:[%s3339_s17 + $0x20] ss:$8 sps:$4 sm:$0xff]  }
  0x1a   : > { %v2832_v25 = vld [vmem:[%s3339_s17 + $0x34] ss:$8 sps:$4 sm:$0xff]   ;;  %v2834_v26 = vld [vmem:[%s3339_s17 + $0x30] ss:$8 sps:$4 sm:$0xff]   ;;  %v2835_v27 = vld [vmem:[%s3339_s17 + $0x44] ss:$8 sps:$4 sm:$0xff]  }
  0x1b   : > { %2590 = vmatpush3.bf16.msra.mxu0 %v2814_v7  ;;  %2761 = vmatpush3.bf16.msra.mxu1 %v2873_v23  ;;  %v2837_v28 = vld [vmem:[%s3339_s17 + $0x40] ss:$8 sps:$4 sm:$0xff]   ;;  %v2838_v29 = vld [vmem:[%s3339_s17 + $0x54] ss:$8 sps:$4 sm:$0xff]   ;;  %v2840_v30 = vld [vmem:[%s3339_s17 + $0x50] ss:$8 sps:$4 sm:$0xff]  }
  0x1c   : > { %2591 = vmatprep.subr.bf16.mxu0 %v2815_v8  ;;  %v2841_v31 = vld [vmem:[%s3339_s17 + $0x64] ss:$8 sps:$4 sm:$0xff]   ;;  %v2843_v32 = vld [vmem:[%s3339_s17 + $0x60] ss:$8 sps:$4 sm:$0xff]   ;;  %v2844_v33 = vld [vmem:[%s3339_s17 + $0x74] ss:$8 sps:$4 sm:$0xff]   ;;  %2758 = vmatprep.subr.bf16.mxu1 %v2874_v48 }
  0x1d   : > { %v2846_v34 = vld [vmem:[%s3339_s17 + $0x70] ss:$8 sps:$4 sm:$0xff]   ;;  %v2847_v35 = vld [vmem:[%s3339_s17 + $0x84] ss:$8 sps:$4 sm:$0xff]   ;;  %v2849_v36 = vld [vmem:[%s3339_s17 + $0x80] ss:$8 sps:$4 sm:$0xff]  }
  0x1e   : > { %v2850_v37 = vld [vmem:[%s3339_s17 + $0x94] ss:$8 sps:$4 sm:$0xff]   ;;  %v2852_v38 = vld [vmem:[%s3339_s17 + $0x90] ss:$8 sps:$4 sm:$0xff]   ;;  %v2853_v39 = vld [vmem:[%s3339_s17 + $0xa4] ss:$8 sps:$4 sm:$0xff]  }
  0x1f   : > { %2592 = vmatpush3.bf16.msra.mxu0 %v2816_v9  ;;  %v2856_v40 = vld [vmem:[%s3339_s17 + $0xa0] ss:$8 sps:$4 sm:$0xff]   ;;  %v2857_v41 = vld [vmem:[%s3339_s17 + $0xb4] ss:$8 sps:$4 sm:$0xff]   ;;  %v2859_v42 = vld [vmem:[%s3339_s17 + $0xb0] ss:$8 sps:$4 sm:$0xff]   ;;  %2762 = vmatpush3.bf16.msra.mxu1 %v2874_v48 }
  0x20   : > { %2593 = vmatprep.subr.bf16.mxu0 %v2817_v10  ;;  %v2860_v43 = vld [vmem:[%s3339_s17 + $0xc4] ss:$8 sps:$4 sm:$0xff]   ;;  %v2862_v44 = vld [vmem:[%s3339_s17 + $0xc0] ss:$8 sps:$4 sm:$0xff]   ;;  %v2863_v45 = vld [vmem:[%s3339_s17 + $0xd4] ss:$8 sps:$4 sm:$0xff]  }
  0x21   : > { %v2865_v46 = vld [vmem:[%s3339_s17 + $0xd0] ss:$8 sps:$4 sm:$0xff]   ;;  %v2866_v47 = vld [vmem:[%s3339_s17 + $0xe4] ss:$8 sps:$4 sm:$0xff]   ;;  %v2869_v49 = vld [vmem:[%s3339_s17 + $0xe0] ss:$8 sps:$4 sm:$0xff]  }
  0x22   : > { %v2870_v50 = vld [vmem:[%s3339_s17 + $0xf4] ss:$8 sps:$4 sm:$0xff]   ;;  %v2872_v51 = vld [vmem:[%s3339_s17 + $0xf0] ss:$8 sps:$4 sm:$0xff]   ;;  %v1319_v53 = vld [vmem:[%s3410_s25] sm:$0xff]  ;;  %s3203_s27 = smov 96  }
  0x23   : > { %2594 = vmatpush3.bf16.msra.mxu0 %v2818_v12  ;;  %v1321_v52 = vld [vmem:[%s3410_s25 + $0x10] sm:$0xff]  ;;  %1383 = vrot.lane.b32.xlu0 %v1319_v53, %s3201_s26  ;;  %v1322_v55 = vld [vmem:[%s3410_s25 + $0x18] sm:$0xff]  ;;  %v1320_v58 = vld [vmem:[%s3410_s25 + $0x8] sm:$0xff]  ;;  %s3989_s24 = scalar_lea.vmem [#allocation2], %s2476_s23  ;;  %s2582_s17 = sshll.u32 %s3278_s13, 13 }
  0x24   : > { %2595 = vmatprep.subr.bf16.mxu0 %v2819_v13  ;;  %1387 = vrot.lane.b32.xlu1 %v1321_v52, %s3201_s26  ;;  %v1323_v2 = vld [vmem:[%s3410_s25 + $0x20] sm:$0xff]  ;;  %v1324_v11 = vld [vmem:[%s3410_s25 + $0x28] sm:$0xff]  ;;  %s2369_s28 = sshll.u32 %s3989_s24, 4  ;;  %s4110_s16 = scalar_lea.hbm %s4168_s8, %s2582_s17  ;;  %s4112_s28 = int_to_ptr.vmem [resolvable:$true] %s2369_s28 }
  0x25   : > { %s4119_s13 = scalar_lea.sflag [#allocation3], %s343_s22 }
  0x27   : > { %2596 = vmatpush3.bf16.msra.mxu0 %v2820_v14  ;;  %1385 = vrot.lane.b32.xlu0 %v1320_v58, %s3201_s26  ;;  %v1325_v14 = vld [vmem:[%s3410_s25 + $0x30] sm:$0xff] }
  0x28   : > { %2597 = vmatprep.subr.bf16.mxu0 %v2821_v15  ;;  %1389 = vrot.lane.b32.xlu1 %v1322_v55, %s3201_s26  ;;  %v1326_v15 = vld [vmem:[%s3410_s25 + $0x38] sm:$0xff] }
  0x2b   : > { %2598 = vmatpush3.bf16.msra.mxu0 %v2822_v16  ;;  %1391 = vrot.lane.b32.xlu0 %v1323_v2, %s3201_s26 }
  0x2c   : > { %2715 = vmatprep.subr.bf16.mxu0 %v2855_v19  ;;  %1393 = vrot.lane.b32.xlu1 %v1324_v11, %s3201_s26 }
  0x2e   : > { %734 = vmatmul.mubr.bf16.vlgmr.msra.gmra.mrb[0].mxu0 %v2823_v17 }
  0x2f   : > { %741 = vmatprep.mubr.bf16.mxu0 %v2826_v18  ;;  %2716 = vmatpush3.bf16.msra.mxu0 %v2855_v19  ;;  %v1327_v19 = vld [vmem:[%s3410_s25 + $0x40] sm:$0xff] }
  0x30   : > { %2717 = vmatprep.subr.bf16.mxu0 %v2868_v20  ;;  %1395 = vrot.lane.b32.xlu0 %v1325_v14, %s3201_s26 }
  0x31   : > { %1397 = vrot.lane.b32.xlu1 %v1326_v15, %s3201_s26 }
  0x33   : > { %2718 = vmatpush3.bf16.msra.mxu0 %v2868_v20 }
  0x34   : > { %2719 = vmatprep.subr.bf16.mxu0 %v2873_v23  ;;  %1399 = vrot.lane.b32.xlu0 %v1327_v19, %s3201_s26 }
  0x36   : > { %742 = vmatmul.mubr.bf16.gmra.mrb[4].mxu0 %v2828_v21 }
  0x37   : > { %749 = vmatprep.mubr.bf16.mxu0 %v2829_v22  ;;  %2720 = vmatpush3.bf16.msra.mxu0 %v2873_v23 }
  0x38   : > { %2721 = vmatprep.subr.bf16.mxu0 %v2874_v48 }
  0x3b   : > { %2722 = vmatpush3.bf16.msra.mxu0 %v2874_v48 }
  0x3e   : > { %750 = vmatmul.mubr.bf16.gmra.mrb[8].mxu0 %v2831_v24 }
  0x3f   : > { %757 = vmatprep.mubr.bf16.mxu0 %v2832_v25  ;;  %v1328_v25 = vld [vmem:[%s3410_s25 + $0x48] sm:$0xff] }
  0x40   : > { %1401 = vrot.lane.b32.xlu1 %v1328_v25, %s3201_s26 }
  0x46   : > { %758 = vmatmul.mubr.bf16.gmra.mrb[12].mxu0 %v2834_v26 }
  0x47   : > { %765 = vmatprep.mubr.bf16.mxu0 %v2835_v27 }
  0x4e   : > { %766 = vmatmul.mubr.bf16.gmra.mrb[16].mxu0 %v2837_v28 }
  0x4f   : > { %773 = vmatprep.mubr.bf16.mxu0 %v2838_v29 }
  0x56   : > { %774 = vmatmul.mubr.bf16.gmra.mrb[20].mxu0 %v2840_v30  ;;  %v1329_v30 = vld [vmem:[%s3410_s25 + $0x50] sm:$0xff] }
  0x57   : > { %781 = vmatprep.mubr.bf16.mxu0 %v2841_v31  ;;  %1403 = vrot.lane.b32.xlu0 %v1329_v30, %s3201_s26 }
  0x5e   : > { %782 = vmatmul.mubr.bf16.gmra.mrb[24].mxu0 %v2843_v32 }
  0x5f   : > { %789 = vmatprep.mubr.bf16.mxu0 %v2844_v33 }
  0x66   : > { %790 = vmatmul.mubr.bf16.gmra.mrb[28].mxu0 %v2846_v34 }
  0x67   : > { %797 = vmatprep.mubr.bf16.mxu0 %v2847_v35  ;;  %v1330_v35 = vld [vmem:[%s3410_s25 + $0x58] sm:$0xff] }
  0x68   : > { %1405 = vrot.lane.b32.xlu1 %v1330_v35, %s3201_s26 }
  0x6e   : > { %798 = vmatmul.mubr.bf16.gmra.mrb[32].mxu0 %v2849_v36 }
  0x6f   : > { %805 = vmatprep.mubr.bf16.mxu0 %v2850_v37 }
  0x76   : > { %806 = vmatmul.mubr.bf16.gmra.mrb[36].mxu0 %v2852_v38 }
  0x77   : > { %813 = vmatprep.mubr.bf16.mxu0 %v2853_v39 }
  0x7e   : > { %814 = vmatmul.mubr.bf16.gmra.mrb[40].mxu0 %v2856_v40  ;;  %v1331_v40 = vld [vmem:[%s3410_s25 + $0x60] sm:$0xff] }
  0x7f   : > { %821 = vmatprep.mubr.bf16.mxu0 %v2857_v41  ;;  %1407 = vrot.lane.b32.xlu0 %v1331_v40, %s3201_s26 }
  0x86   : > { %822 = vmatmul.mubr.bf16.gmra.mrb[44].mxu0 %v2859_v42 }
  0x87   : > { %829 = vmatprep.mubr.bf16.mxu0 %v2860_v43 }
  0x8e   : > { %830 = vmatmul.mubr.bf16.gmra.mrb[48].mxu0 %v2862_v44 }
  0x8f   : > { %837 = vmatprep.mubr.bf16.mxu0 %v2863_v45 }
  0x96   : > { %838 = vmatmul.mubr.bf16.gmra.mrb[52].mxu0 %v2865_v46  ;;  %v1332_v46 = vld [vmem:[%s3410_s25 + $0x68] sm:$0xff] }
  0x97   : > { %845 = vmatprep.mubr.bf16.mxu0 %v2866_v47  ;;  %1409 = vrot.lane.b32.xlu1 %v1332_v46, %s3201_s26 }
  0x9e   : > { %846 = vmatmul.mubr.bf16.gmra.mrb[56].mxu0 %v2869_v49 }
  0x9f   : > { %853 = vmatprep.mubr.bf16.mxu0 %v2870_v50 }
  0xa6   : > { %854 = vmatmul.mubr.bf16.gmra.mrb[60].mxu0 %v2872_v51  ;;  %v1333_v51 = vld [vmem:[%s3410_s25 + $0x70] sm:$0xff] }
  0xa7   : > { %1411 = vrot.lane.b32.xlu0 %v1333_v51, %s3201_s26 }
 0x101   : > { %v2599_v54 = vpop.f32.mrb[0].mxu0 }
 0x102   : > { %v2600_v57 = vpop.f32.mrb[1].mxu0 }
 0x103   : > { %v2601_v59 = vadd.f32 %v2600_v57, %v2599_v54  ;;  %v2602_v60 = vpop.f32.mrb[2].mxu0  ;;  %v1334_v57 = vld [vmem:[%s3410_s25 + $0x78] sm:$0xff] }
 0x104   : > { %v2603_v61 = vpop.f32.mrb[3].mxu0  ;;  %1413 = vrot.lane.b32.xlu1 %v1334_v57, %s3201_s26 }
 0x105   : > { %v736_v62 = vadd.f32 %v2601_v59, %v3420_v56  ;;  %v2604_v63 = vadd.f32 %v2603_v61, %v2602_v60 }
 0x107   : > { %v862_v0 = vmul.f32 0.5, %v736_v62  ;;  %v739_v1 = vadd.f32 %v2604_v63, %v3420_v56 }
 0x109   : > { %2881 = vtanh.f32 %v862_v0  ;;  %v863_v3 = vmul.f32 0.5, %v739_v1  ;;  %v2605_v4 = vpop.f32.mrb[4].mxu0 }
 0x10a   : > { %v2606_v5 = vpop.f32.mrb[5].mxu0 }
 0x10b   : > { %2883 = vtanh.f32 %v863_v3  ;;  %v2607_v6 = vadd.f32 %v2606_v5, %v2605_v4  ;;  %v2608_v7 = vpop.f32.mrb[6].mxu0 }
 0x10c   : > { %v2609_v8 = vpop.f32.mrb[7].mxu0 }
 0x10d   : > { %v744_v9 = vadd.f32 %v2607_v6, %v3420_v56  ;;  %v2610_v10 = vadd.f32 %v2609_v8, %v2608_v7 }
 0x10f   : > { %v864_v12 = vmul.f32 0.5, %v744_v9  ;;  %v747_v13 = vadd.f32 %v2610_v10, %v3420_v56 }
 0x111   : > { %2885 = vtanh.f32 %v864_v12  ;;  %v865_v16 = vmul.f32 0.5, %v747_v13  ;;  %v2611_v17 = vpop.f32.mrb[8].mxu0 }
 0x112   : > { %v2612_v18 = vpop.f32.mrb[9].mxu0 }
 0x113   : > { %v2882_v20 = vpop.eup %2881  ;;  %2887 = vtanh.f32 %v865_v16  ;;  %v2613_v21 = vadd.f32 %v2612_v18, %v2611_v17  ;;  %v2614_v22 = vpop.f32.mrb[10].mxu0 }
 0x114   : > { %v926_v23 = vmul.f32 0.5, %v2882_v20  ;;  %v2615_v24 = vpop.f32.mrb[11].mxu0 }
 0x115   : > { %v2884_v26 = vpop.eup %2883  ;;  %v752_v27 = vadd.f32 %v2613_v21, %v3420_v56  ;;  %v2616_v28 = vadd.f32 %v2615_v24, %v2614_v22 }
 0x116   : > { %v927_v29 = vmul.f32 0.5, %v2884_v26  ;;  %v958_v33 = vadd.f32 0.5, %v926_v23 }
 0x117   : > { %v866_v31 = vmul.f32 0.5, %v752_v27  ;;  %v755_v32 = vadd.f32 %v2616_v28, %v3420_v56 }
 0x118   : > { %v959_v34 = vadd.f32 0.5, %v927_v29 }
 0x119   : > { %2889 = vtanh.f32 %v866_v31  ;;  %v867_v36 = vmul.f32 0.5, %v755_v32  ;;  %v2617_v37 = vpop.f32.mrb[12].mxu0 }
 0x11a   : > { %v2618_v38 = vpop.f32.mrb[13].mxu0  ;;  %v990_v39 = vpack.c.bf16 %v959_v34, %v958_v33 }
 0x11b   : > { %v2886_v41 = vpop.eup %2885  ;;  %2891 = vtanh.f32 %v867_v36  ;;  %v2619_v42 = vadd.f32 %v2618_v38, %v2617_v37  ;;  %v2620_v43 = vpop.f32.mrb[14].mxu0 }
 0x11c   : > { %v928_v44 = vmul.f32 0.5, %v2886_v41  ;;  %v2621_v45 = vpop.f32.mrb[15].mxu0  ;;  %2723 = vmatprep.mubr.msk.bf16.mxu0 %vm1045_vm0, %v990_v39 }
 0x11d   : > { %v2888_v47 = vpop.eup %2887  ;;  %v760_v48 = vadd.f32 %v2619_v42, %v3420_v56  ;;  %v2622_v49 = vadd.f32 %v2621_v45, %v2620_v43 }
 0x11e   : > { %v929_v50 = vmul.f32 0.5, %v2888_v47  ;;  %v960_v54 = vadd.f32 0.5, %v928_v44 }
 0x11f   : > { %v868_v52 = vmul.f32 0.5, %v760_v48  ;;  %v763_v53 = vadd.f32 %v2622_v49, %v3420_v56 }
 0x120   : > { %v961_v55 = vadd.f32 0.5, %v929_v50 }
 0x121   : > { %2893 = vtanh.f32 %v868_v52  ;;  %v869_v58 = vmul.f32 0.5, %v763_v53  ;;  %v2623_v59 = vpop.f32.mrb[16].mxu0 }
 0x122   : > { %v991_v60 = vpack.c.bf16 %v961_v55, %v960_v54  ;;  %v2624_v61 = vpop.f32.mrb[17].mxu0 }
 0x123   : > { %v2890_v62 = vpop.eup %2889  ;;  %2895 = vtanh.f32 %v869_v58  ;;  %v2625_v63 = vadd.f32 %v2624_v61, %v2623_v59  ;;  %v2626_v0 = vpop.f32.mrb[18].mxu0 }
 0x124   : > { %v930_v1 = vmul.f32 0.5, %v2890_v62  ;;  %v2627_v2 = vpop.f32.mrb[19].mxu0  ;;  %2724 = vmatmul.mubr.msk.bf16.vlgmr.msra.gmra.mrb[64].mxu0 %vm1045_vm0, %v991_v60 }
 0x125   : > { %v2892_v3 = vpop.eup %2891  ;;  %v768_v4 = vadd.f32 %v2625_v63, %v3420_v56  ;;  %v2628_v5 = vadd.f32 %v2627_v2, %v2626_v0 }
 0x126   : > { %v931_v6 = vmul.f32 0.5, %v2892_v3  ;;  %v962_v9 = vadd.f32 0.5, %v930_v1 }
 0x127   : > { %v870_v7 = vmul.f32 0.5, %v768_v4  ;;  %v771_v8 = vadd.f32 %v2628_v5, %v3420_v56 }
 0x128   : > { %v963_v10 = vadd.f32 0.5, %v931_v6 }
 0x129   : > { %2897 = vtanh.f32 %v870_v7  ;;  %v871_v11 = vmul.f32 0.5, %v771_v8  ;;  %v2629_v12 = vpop.f32.mrb[20].mxu0 }
 0x12a   : > { %v2630_v13 = vpop.f32.mrb[21].mxu0  ;;  %v992_v14 = vpack.c.bf16 %v963_v10, %v962_v9 }
 0x12b   : > { %v2894_v15 = vpop.eup %2893  ;;  %2899 = vtanh.f32 %v871_v11  ;;  %v2631_v16 = vadd.f32 %v2630_v13, %v2629_v12  ;;  %v2632_v17 = vpop.f32.mrb[22].mxu0 }
 0x12c   : > { %v932_v18 = vmul.f32 0.5, %v2894_v15  ;;  %v2633_v19 = vpop.f32.mrb[23].mxu0  ;;  %2727 = vmatprep.mubr.msk.bf16.mxu0 %vm1045_vm0, %v992_v14 }
 0x12d   : > { %v2896_v20 = vpop.eup %2895  ;;  %v776_v21 = vadd.f32 %v2631_v16, %v3420_v56  ;;  %v2634_v22 = vadd.f32 %v2633_v19, %v2632_v17 }
 0x12e   : > { %v933_v23 = vmul.f32 0.5, %v2896_v20  ;;  %v964_v26 = vadd.f32 0.5, %v932_v18 }
 0x12f   : > { %v872_v24 = vmul.f32 0.5, %v776_v21  ;;  %v779_v25 = vadd.f32 %v2634_v22, %v3420_v56 }
 0x130   : > { %v965_v27 = vadd.f32 0.5, %v933_v23 }
 0x131   : > { %2901 = vtanh.f32 %v872_v24  ;;  %v873_v28 = vmul.f32 0.5, %v779_v25  ;;  %v2635_v29 = vpop.f32.mrb[24].mxu0 }
 0x132   : > { %v2636_v30 = vpop.f32.mrb[25].mxu0  ;;  %v993_v31 = vpack.c.bf16 %v965_v27, %v964_v26 }
 0x133   : > { %v2898_v32 = vpop.eup %2897  ;;  %2903 = vtanh.f32 %v873_v28  ;;  %v2637_v33 = vadd.f32 %v2636_v30, %v2635_v29  ;;  %v2638_v34 = vpop.f32.mrb[26].mxu0 }
 0x134   : > { %v934_v35 = vmul.f32 0.5, %v2898_v32  ;;  %v2639_v36 = vpop.f32.mrb[27].mxu0  ;;  %2728 = vmatmul.mubr.msk.bf16.gmra.mrb[68].mxu0 %vm1045_vm0, %v993_v31 }
 0x135   : > { %v2900_v37 = vpop.eup %2899  ;;  %v784_v38 = vadd.f32 %v2637_v33, %v3420_v56  ;;  %v2640_v39 = vadd.f32 %v2639_v36, %v2638_v34 }
 0x136   : > { %v935_v40 = vmul.f32 0.5, %v2900_v37  ;;  %v966_v43 = vadd.f32 0.5, %v934_v35 }
 0x137   : > { %v874_v41 = vmul.f32 0.5, %v784_v38  ;;  %v787_v42 = vadd.f32 %v2640_v39, %v3420_v56 }
 0x138   : > { %v967_v44 = vadd.f32 0.5, %v935_v40 }
 0x139   : > { %2905 = vtanh.f32 %v874_v41  ;;  %v875_v45 = vmul.f32 0.5, %v787_v42  ;;  %v2641_v46 = vpop.f32.mrb[28].mxu0 }
 0x13a   : > { %v2642_v47 = vpop.f32.mrb[29].mxu0  ;;  %v994_v48 = vpack.c.bf16 %v967_v44, %v966_v43 }
 0x13b   : > { %v2902_v49 = vpop.eup %2901  ;;  %2907 = vtanh.f32 %v875_v45  ;;  %v2643_v50 = vadd.f32 %v2642_v47, %v2641_v46  ;;  %v2644_v51 = vpop.f32.mrb[30].mxu0 }
 0x13c   : > { %v936_v52 = vmul.f32 0.5, %v2902_v49  ;;  %v2645_v53 = vpop.f32.mrb[31].mxu0  ;;  %2731 = vmatprep.mubr.msk.bf16.mxu0 %vm1045_vm0, %v994_v48 }
 0x13d   : > { %v2904_v54 = vpop.eup %2903  ;;  %v792_v55 = vadd.f32 %v2643_v50, %v3420_v56  ;;  %v2646_v57 = vadd.f32 %v2645_v53, %v2644_v51 }
 0x13e   : > { %v937_v58 = vmul.f32 0.5, %v2904_v54  ;;  %v968_v61 = vadd.f32 0.5, %v936_v52 }
 0x13f   : > { %v876_v59 = vmul.f32 0.5, %v792_v55  ;;  %v795_v60 = vadd.f32 %v2646_v57, %v3420_v56 }
 0x140   : > { %v969_v62 = vadd.f32 0.5, %v937_v58 }
 0x141   : > { %2909 = vtanh.f32 %v876_v59  ;;  %v877_v63 = vmul.f32 0.5, %v795_v60  ;;  %v2647_v0 = vpop.f32.mrb[32].mxu0 }
 0x142   : > { %v995_v1 = vpack.c.bf16 %v969_v62, %v968_v61  ;;  %v2648_v2 = vpop.f32.mrb[33].mxu0 }
 0x143   : > { %v2906_v3 = vpop.eup %2905  ;;  %2911 = vtanh.f32 %v877_v63  ;;  %v2649_v4 = vadd.f32 %v2648_v2, %v2647_v0  ;;  %v2650_v5 = vpop.f32.mrb[34].mxu0 }
 0x144   : > { %2732 = vmatmul.mubr.msk.bf16.gmra.mrb[72].mxu0 %vm1045_vm0, %v995_v1  ;;  %v938_v6 = vmul.f32 0.5, %v2906_v3  ;;  %v2651_v7 = vpop.f32.mrb[35].mxu0 }
 0x145   : > { %v2908_v8 = vpop.eup %2907  ;;  %v800_v9 = vadd.f32 %v2649_v4, %v3420_v56  ;;  %v2652_v10 = vadd.f32 %v2651_v7, %v2650_v5 }
 0x146   : > { %v939_v11 = vmul.f32 0.5, %v2908_v8  ;;  %v970_v14 = vadd.f32 0.5, %v938_v6 }
 0x147   : > { %v878_v12 = vmul.f32 0.5, %v800_v9  ;;  %v803_v13 = vadd.f32 %v2652_v10, %v3420_v56 }
 0x148   : > { %v971_v15 = vadd.f32 0.5, %v939_v11 }
 0x149   : > { %2913 = vtanh.f32 %v878_v12  ;;  %v879_v16 = vmul.f32 0.5, %v803_v13  ;;  %v2653_v17 = vpop.f32.mrb[36].mxu0 }
 0x14a   : > { %v996_v18 = vpack.c.bf16 %v971_v15, %v970_v14  ;;  %v2654_v19 = vpop.f32.mrb[37].mxu0 }
 0x14b   : > { %v2910_v20 = vpop.eup %2909  ;;  %2915 = vtanh.f32 %v879_v16  ;;  %v2655_v21 = vadd.f32 %v2654_v19, %v2653_v17  ;;  %v2656_v22 = vpop.f32.mrb[38].mxu0 }
 0x14c   : > { %v940_v23 = vmul.f32 0.5, %v2910_v20  ;;  %2735 = vmatprep.mubr.msk.bf16.mxu1 %vm1045_vm0, %v996_v18  ;;  %v2657_v24 = vpop.f32.mrb[39].mxu0 }
 0x14d   : > { %v2912_v25 = vpop.eup %2911  ;;  %v808_v26 = vadd.f32 %v2655_v21, %v3420_v56  ;;  %v2658_v27 = vadd.f32 %v2657_v24, %v2656_v22 }
 0x14e   : > { %v941_v28 = vmul.f32 0.5, %v2912_v25  ;;  %v972_v31 = vadd.f32 0.5, %v940_v23 }
 0x14f   : > { %v880_v29 = vmul.f32 0.5, %v808_v26  ;;  %v811_v30 = vadd.f32 %v2658_v27, %v3420_v56 }
 0x150   : > { %v973_v32 = vadd.f32 0.5, %v941_v28 }
 0x151   : > { %2917 = vtanh.f32 %v880_v29  ;;  %v881_v33 = vmul.f32 0.5, %v811_v30  ;;  %v2659_v34 = vpop.f32.mrb[40].mxu0 }
 0x152   : > { %v997_v35 = vpack.c.bf16 %v973_v32, %v972_v31  ;;  %v2660_v36 = vpop.f32.mrb[41].mxu0 }
 0x153   : > { %v2914_v37 = vpop.eup %2913  ;;  %2919 = vtanh.f32 %v881_v33  ;;  %v2661_v38 = vadd.f32 %v2660_v36, %v2659_v34  ;;  %v2662_v39 = vpop.f32.mrb[42].mxu0 }
 0x154   : > { %2736 = vmatmul.mubr.msk.bf16.vlgmr.msra.gmra.mrb[0].mxu1 %vm1045_vm0, %v997_v35  ;;  %v942_v40 = vmul.f32 0.5, %v2914_v37  ;;  %v2663_v41 = vpop.f32.mrb[43].mxu0 }
 0x155   : > { %v2916_v42 = vpop.eup %2915  ;;  %v816_v43 = vadd.f32 %v2661_v38, %v3420_v56  ;;  %v2664_v44 = vadd.f32 %v2663_v41, %v2662_v39 }
 0x156   : > { %v974_v45 = vadd.f32 0.5, %v942_v40  ;;  %v943_v46 = vmul.f32 0.5, %v2916_v42 }
 0x157   : > { %v882_v47 = vmul.f32 0.5, %v816_v43  ;;  %v819_v48 = vadd.f32 %v2664_v44, %v3420_v56 }
 0x158   : > { %v975_v49 = vadd.f32 0.5, %v943_v46 }
 0x159   : > { %2921 = vtanh.f32 %v882_v47  ;;  %v883_v50 = vmul.f32 0.5, %v819_v48  ;;  %v2665_v51 = vpop.f32.mrb[44].mxu0 }
 0x15a   : > { %v2666_v52 = vpop.f32.mrb[45].mxu0  ;;  %v998_v53 = vpack.c.bf16 %v975_v49, %v974_v45 }
 0x15b   : > { %v2918_v54 = vpop.eup %2917  ;;  %2923 = vtanh.f32 %v883_v50  ;;  %v2667_v55 = vadd.f32 %v2666_v52, %v2665_v51  ;;  %v2668_v57 = vpop.f32.mrb[46].mxu0 }
 0x15c   : > { %v944_v58 = vmul.f32 0.5, %v2918_v54  ;;  %v2669_v59 = vpop.f32.mrb[47].mxu0  ;;  %2739 = vmatprep.mubr.msk.bf16.mxu1 %vm1045_vm0, %v998_v53 }
 0x15d   : > { %v2920_v60 = vpop.eup %2919  ;;  %v824_v61 = vadd.f32 %v2667_v55, %v3420_v56  ;;  %v2670_v62 = vadd.f32 %v2669_v59, %v2668_v57 }
 0x15e   : > { %v976_v63 = vadd.f32 0.5, %v944_v58  ;;  %v945_v0 = vmul.f32 0.5, %v2920_v60 }
 0x15f   : > { %v884_v1 = vmul.f32 0.5, %v824_v61  ;;  %v827_v2 = vadd.f32 %v2670_v62, %v3420_v56 }
 0x160   : > { %v977_v3 = vadd.f32 0.5, %v945_v0 }
 0x161   : > { %2925 = vtanh.f32 %v884_v1  ;;  %v885_v4 = vmul.f32 0.5, %v827_v2  ;;  %v2671_v5 = vpop.f32.mrb[48].mxu0 }
 0x162   : > { %v999_v6 = vpack.c.bf16 %v977_v3, %v976_v63  ;;  %v2672_v7 = vpop.f32.mrb[49].mxu0 }
 0x163   : > { %v2922_v8 = vpop.eup %2921  ;;  %2927 = vtanh.f32 %v885_v4  ;;  %v2673_v9 = vadd.f32 %v2672_v7, %v2671_v5  ;;  %v2674_v10 = vpop.f32.mrb[50].mxu0 }
 0x164   : > { %v946_v11 = vmul.f32 0.5, %v2922_v8  ;;  %2740 = vmatmul.mubr.msk.bf16.gmra.mrb[4].mxu1 %vm1045_vm0, %v999_v6  ;;  %v2675_v12 = vpop.f32.mrb[51].mxu0 }
 0x165   : > { %v2924_v13 = vpop.eup %2923  ;;  %v832_v14 = vadd.f32 %v2673_v9, %v3420_v56  ;;  %v2676_v15 = vadd.f32 %v2675_v12, %v2674_v10 }
 0x166   : > { %v978_v16 = vadd.f32 0.5, %v946_v11  ;;  %v947_v17 = vmul.f32 0.5, %v2924_v13 }
 0x167   : > { %v886_v18 = vmul.f32 0.5, %v832_v14  ;;  %v835_v19 = vadd.f32 %v2676_v15, %v3420_v56 }
 0x168   : > { %v979_v20 = vadd.f32 0.5, %v947_v17 }
 0x169   : > { %2929 = vtanh.f32 %v886_v18  ;;  %v887_v21 = vmul.f32 0.5, %v835_v19  ;;  %v2677_v22 = vpop.f32.mrb[52].mxu0 }
 0x16a   : > { %v2678_v23 = vpop.f32.mrb[53].mxu0  ;;  %v1000_v24 = vpack.c.bf16 %v979_v20, %v978_v16 }
 0x16b   : > { %v2926_v25 = vpop.eup %2925  ;;  %2931 = vtanh.f32 %v887_v21  ;;  %v2679_v26 = vadd.f32 %v2678_v23, %v2677_v22  ;;  %v2680_v27 = vpop.f32.mrb[54].mxu0 }
 0x16c   : > { %v948_v28 = vmul.f32 0.5, %v2926_v25  ;;  %v2681_v29 = vpop.f32.mrb[55].mxu0  ;;  %2743 = vmatprep.mubr.msk.bf16.mxu1 %vm1045_vm0, %v1000_v24  ;;  %v2875_v24 = vld [vmem:[%s4165_s5] ss:$8 sps:$4 sm:$0xff]   ;;  %v2877_v25 = vld [vmem:[%s4165_s5 + $0x4] ss:$8 sps:$4 sm:$0xff]  }
 0x16d   : > { %v2928_v30 = vpop.eup %2927  ;;  %v840_v31 = vadd.f32 %v2679_v26, %v3420_v56  ;;  %v2682_v32 = vadd.f32 %v2681_v29, %v2680_v27  ;;  %1772 = vmatprep.subr.bf16.mxu1 %v2877_v25  ;;  %v3506_v26 = vld [vmem:[%s4164_s4] ss:$0 sm:$0xff] }
 0x16e   : > { %v980_v33 = vadd.f32 0.5, %v948_v28  ;;  %v949_v34 = vmul.f32 0.5, %v2928_v30  ;;  %1773 = vmatpush1.bf16.msra.mxu1 %v2875_v24 }
 0x16f   : > { %v888_v35 = vmul.f32 0.5, %v840_v31  ;;  %v843_v36 = vadd.f32 %v2682_v32, %v3420_v56 }
 0x170   : > { %v981_v37 = vadd.f32 0.5, %v949_v34 }
 0x171   : > { %2933 = vtanh.f32 %v888_v35  ;;  %v889_v38 = vmul.f32 0.5, %v843_v36  ;;  %v2683_v39 = vpop.f32.mrb[56].mxu0 }
 0x172   : > { %v1001_v40 = vpack.c.bf16 %v981_v37, %v980_v33  ;;  %v2684_v41 = vpop.f32.mrb[57].mxu0 }
 0x173   : > { %v2930_v42 = vpop.eup %2929  ;;  %2935 = vtanh.f32 %v889_v38  ;;  %v2685_v43 = vadd.f32 %v2684_v41, %v2683_v39  ;;  %v2686_v44 = vpop.f32.mrb[58].mxu0  ;;  %v2880_v39 = vld [vmem:[%s4165_s5 + $0x14] ss:$8 sps:$4 sm:$0xff]  }
 0x174   : > { %v950_v45 = vmul.f32 0.5, %v2930_v42  ;;  %2744 = vmatmul.mubr.msk.bf16.gmra.mrb[8].mxu1 %vm1045_vm0, %v1001_v40  ;;  %v2687_v46 = vpop.f32.mrb[59].mxu0  ;;  %v2878_v40 = vld [vmem:[%s4165_s5 + $0x10] ss:$8 sps:$4 sm:$0xff]   ;;  %1774 = vmatprep.subr.bf16.mxu1 %v2880_v39  ;;  %v1384_v41 = vpop.permute.xlu0 %1383  ;;  %v3202_v42 = vmov 0  }
 0x175   : > { %v2932_v47 = vpop.eup %2931  ;;  %v848_v48 = vadd.f32 %v2685_v43, %v3420_v56  ;;  %v2688_v49 = vadd.f32 %v2687_v46, %v2686_v44  ;;  %1775 = vmatpush1.bf16.msra.mxu1 %v2878_v40 }
 0x176   : > { %v982_v50 = vadd.f32 0.5, %v950_v45  ;;  %v951_v51 = vmul.f32 0.5, %v2932_v47 }
 0x177   : > { %v890_v52 = vmul.f32 0.5, %v848_v48  ;;  %v851_v53 = vadd.f32 %v2688_v49, %v3420_v56 }
 0x178   : > { %v983_v54 = vadd.f32 0.5, %v951_v51  ;;  %v1386_v47 = vpop.permute.xlu0 %1385 }
 0x179   : > { %2937 = vtanh.f32 %v890_v52  ;;  %v891_v55 = vmul.f32 0.5, %v851_v53  ;;  %v2689_v57 = vpop.f32.mrb[60].mxu0 }
 0x17a   : > { %v2690_v58 = vpop.f32.mrb[61].mxu0  ;;  %v1002_v59 = vpack.c.bf16 %v983_v54, %v982_v50 }
 0x17b   : > { %v2934_v60 = vpop.eup %2933  ;;  %2939 = vtanh.f32 %v891_v55  ;;  %v2691_v61 = vadd.f32 %v2690_v58, %v2689_v57  ;;  %v2692_v62 = vpop.f32.mrb[62].mxu0 }
 0x17c   : > { %v952_v63 = vmul.f32 0.5, %v2934_v60  ;;  %v2693_v0 = vpop.f32.mrb[63].mxu0  ;;  %2747 = vmatprep.mubr.msk.bf16.mxu1 %vm1045_vm0, %v1002_v59  ;;  %v1388_v55 = vpop.permute.xlu1 %1387 }
 0x17d   : > { %v2936_v1 = vpop.eup %2935  ;;  %v856_v2 = vadd.f32 %v2691_v61, %v3420_v56  ;;  %v2694_v3 = vadd.f32 %v2693_v0, %v2692_v62 }
 0x17e   : > { %v984_v4 = vadd.f32 0.5, %v952_v63  ;;  %v953_v5 = vmul.f32 0.5, %v2936_v1 }
 0x17f   : > { %v892_v6 = vmul.f32 0.5, %v856_v2  ;;  %v859_v7 = vadd.f32 %v2694_v3, %v3420_v56  ;;  %v1335_v2 = vld [vmem:[%s3410_s25 + $0x80] sm:$0xff] }
 0x180   : > { %v985_v8 = vadd.f32 0.5, %v953_v5  ;;  %v1336_v5 = vld [vmem:[%s3410_s25 + $0x88] sm:$0xff] }
 0x181   : > { %2941 = vtanh.f32 %v892_v6  ;;  %v893_v9 = vmul.f32 0.5, %v859_v7  ;;  %v1390_v6 = vpop.permute.xlu1 %1389 }
 0x182   : > { %v1003_v10 = vpack.c.bf16 %v985_v8, %v984_v4 }
 0x183   : > { %v2938_v11 = vpop.eup %2937  ;;  %2943 = vtanh.f32 %v893_v9  ;;  %v1337_v9 = vld [vmem:[%s3410_s25 + $0x90] sm:$0xff] }
 0x184   : > { %v954_v12 = vmul.f32 0.5, %v2938_v11  ;;  %2748 = vmatmul.mubr.msk.bf16.gmra.mrb[12].mxu1 %vm1045_vm0, %v1003_v10  ;;  %v1338_v10 = vld [vmem:[%s3410_s25 + $0x98] sm:$0xff] }
 0x185   : > { %v2940_v13 = vpop.eup %2939 }
 0x186   : > { %v986_v14 = vadd.f32 0.5, %v954_v12  ;;  %v955_v15 = vmul.f32 0.5, %v2940_v13 }
 0x188   : > { %v987_v16 = vadd.f32 0.5, %v955_v15 }
 0x18a   : > { %v1004_v17 = vpack.c.bf16 %v987_v16, %v986_v14  ;;  %v1392_v14 = vpop.permute.xlu0 %1391 }
 0x18b   : > { %v2942_v18 = vpop.eup %2941 }
 0x18c   : > { %v956_v19 = vmul.f32 0.5, %v2942_v18  ;;  %2751 = vmatprep.mubr.msk.bf16.mxu1 %vm1045_vm0, %v1004_v17 }
 0x18d   : > { %v2944_v20 = vpop.eup %2943 }
 0x18e   : > { %v988_v56 = vadd.f32 0.5, %v956_v19  ;;  %v957_v21 = vmul.f32 0.5, %v2944_v20  ;;  %v1396_v39 = vpop.permute.xlu0 %1395 }
 0x190   : > { %v989_v22 = vadd.f32 0.5, %v957_v21 }
 0x192   : > { %v1005_v23 = vpack.c.bf16 %v989_v22, %v988_v56  ;;  %v1394_v22 = vpop.permute.xlu1 %1393 }
 0x194   : > { %2752 = vmatmul.mubr.msk.bf16.gmra.mrb[16].mxu1 %vm1045_vm0, %v1005_v23 }
 0x195   : > { %1804 = vmatprep.mubr.bf16.mxu1 %v3202_v42 }
 0x1f7   : > { %v2725_v27 = vpop.f32.mrb[64].mxu0 }
 0x1f8   : > { %v3509_v28 = vadd.f32 %v2725_v27, %v3506_v26  ;;  %v1128_v29 = vpop.f32.mrb[65].mxu0 }
 0x1f9   : > { %v3512_v30 = vadd.f32 %v3506_v26, %v1128_v29  ;;  %v2726_v31 = vpop.f32.mrb[66].mxu0 }
 0x1fa   : > { %v1259_v32 = vmul.f32 1.442695, %v3509_v28  ;;  %v3516_v33 = vadd.f32 %v2726_v31, %v3506_v26  ;;  %v1131_v34 = vpop.f32.mrb[67].mxu0 }
 0x1fb   : > { %v1255_v35 = vmul.f32 1.442695, %v3512_v30  ;;  %v3520_v36 = vadd.f32 %v3506_v26, %v1131_v34 }
 0x1fc   : > { %2945 = vpow2.f32 %v1259_v32  ;;  %v1261_v37 = vmul.f32 1.442695, %v3516_v33 }
 0x1fd   : > { %2947 = vpow2.f32 %v1255_v35  ;;  %v1257_v38 = vmul.f32 1.442695, %v3520_v36 }
 0x1fe   : > { %2949 = vpow2.f32 %v1261_v37  ;;  %v1339_v37 = vld [vmem:[%s3410_s25 + $0xa0] sm:$0xff] }
 0x1ff   : > { %2951 = vpow2.f32 %v1257_v38 }
 0x206   : > { %v2946_v43 = vpop.eup %2945 }
 0x207   : > { %v2948_v44 = vpop.eup %2947  ;;  %v2287_v45 = vsel %vm1723_vm1, %v3509_v28, %v2946_v43  ;;  %v2729_v46 = vpop.f32.mrb[68].mxu0  ;;  %v1481_v7 = vmul.f32 %v2946_v43, %v1388_v55 }
 0x208   : > { %v2950_v48 = vpop.eup %2949  ;;  %2319 = vst.msk [vmem:[%s3535_s21 + $0x10] sm:$0xff] %vm1045_vm0, %v2287_v45  ;;  %v2285_v49 = vsel %vm1723_vm1, %v3512_v30, %v2948_v44  ;;  %v1479_v50 = vmul.f32 %v2948_v44, %v1384_v41  ;;  %v3544_v51 = vadd.f32 %v2729_v46, %v3506_v26  ;;  %v1144_v52 = vpop.f32.mrb[69].mxu0  ;;  %v1340_v41 = vld [vmem:[%s3410_s25 + $0xa8] sm:$0xff]  ;;  %v1341_v46 = vld [vmem:[%s3410_s25 + $0xb0] sm:$0xff] }
 0x209   : > { %v2952_v53 = vpop.eup %2951  ;;  %2317 = vst.msk [vmem:[%s3535_s21] sm:$0xff] %vm1045_vm0, %v2285_v49  ;;  %v2288_v54 = vsel %vm1723_vm1, %v3516_v33, %v2950_v48  ;;  %v3551_v57 = vadd.f32 %v3506_v26, %v1144_v52  ;;  %v2730_v58 = vpop.f32.mrb[70].mxu0  ;;  %v1482_v8 = vmul.f32 %v2950_v48, %v1390_v6 }
 0x20a   : > { %2320 = vst.msk [vmem:[%s3535_s21 + $0x18] sm:$0xff] %vm1045_vm0, %v2288_v54  ;;  %v2286_v59 = vsel %vm1723_vm1, %v3520_v36, %v2952_v53  ;;  %v1267_v60 = vmul.f32 1.442695, %v3544_v51  ;;  %v1480_v61 = vmul.f32 %v2952_v53, %v1386_v47  ;;  %v3559_v62 = vadd.f32 %v2730_v58, %v3506_v26  ;;  %v1147_v63 = vpop.f32.mrb[71].mxu0  ;;  %1543 = vrot.lane.b32.xlu0 %v1479_v50, %s3203_s27  ;;  %v1398_v43 = vpop.permute.xlu1 %1397  ;;  %v1342_v47 = vld [vmem:[%s3410_s25 + $0xb8] sm:$0xff] }
 0x20b   : > { %2318 = vst.msk [vmem:[%s3535_s21 + $0x8] sm:$0xff] %vm1045_vm0, %v2286_v59  ;;  %v1263_v0 = vmul.f32 1.442695, %v3551_v57  ;;  %v3566_v1 = vadd.f32 %v3506_v26, %v1147_v63  ;;  %v1400_v52 = vpop.permute.xlu0 %1399 }
 0x20c   : > { %2953 = vpow2.f32 %v1267_v60  ;;  %v1269_v3 = vmul.f32 1.442695, %v3559_v62  ;;  %1545 = vrot.lane.b32.xlu1 %v1480_v61, %s3203_s27 }
 0x20d   : > { %2955 = vpow2.f32 %v1263_v0  ;;  %v1265_v4 = vmul.f32 1.442695, %v3566_v1 }
 0x20e   : > { %2957 = vpow2.f32 %v1269_v3  ;;  %1415 = vrot.lane.b32.xlu0 %v1335_v2, %s3201_s26  ;;  %v1402_v0 = vpop.permute.xlu1 %1401 }
 0x20f   : > { %2959 = vpow2.f32 %v1265_v4 }
 0x210   : > { %1417 = vrot.lane.b32.xlu1 %v1336_v5, %s3201_s26 }
 0x212   : > { %1547 = vrot.lane.b32.xlu0 %v1481_v7, %s3203_s27 }
 0x214   : > { %1549 = vrot.lane.b32.xlu1 %v1482_v8, %s3203_s27 }
 0x216   : > { %v2954_v11 = vpop.eup %2953  ;;  %1419 = vrot.lane.b32.xlu0 %v1337_v9, %s3201_s26 }
 0x217   : > { %v2956_v12 = vpop.eup %2955  ;;  %v2291_v13 = vsel %vm1723_vm1, %v3544_v51, %v2954_v11  ;;  %v2733_v15 = vpop.f32.mrb[72].mxu0  ;;  %v1485_v44 = vmul.f32 %v2954_v11, %v1396_v39  ;;  %v1343_v11 = vld [vmem:[%s3410_s25 + $0xc0] sm:$0xff] }
 0x218   : > { %v2958_v16 = vpop.eup %2957  ;;  %2323 = vst.msk [vmem:[%s3535_s21 + $0x30] sm:$0xff] %vm1045_vm0, %v2291_v13  ;;  %v2289_v17 = vsel %vm1723_vm1, %v3551_v57, %v2956_v12  ;;  %v1483_v18 = vmul.f32 %v2956_v12, %v1392_v14  ;;  %v3587_v19 = vadd.f32 %v2733_v15, %v3506_v26  ;;  %v1160_v20 = vpop.f32.mrb[73].mxu0  ;;  %1421 = vrot.lane.b32.xlu1 %v1338_v10, %s3201_s26  ;;  %v1344_v15 = vld [vmem:[%s3410_s25 + $0xc8] sm:$0xff] }
 0x219   : > { %v2960_v56 = vpop.eup %2959  ;;  %2321 = vst.msk [vmem:[%s3535_s21 + $0x20] sm:$0xff] %vm1045_vm0, %v2289_v17  ;;  %v2292_v21 = vsel %vm1723_vm1, %v3559_v62, %v2958_v16  ;;  %v3595_v23 = vadd.f32 %v3506_v26, %v1160_v20  ;;  %v2734_v24 = vpop.f32.mrb[74].mxu0  ;;  %v1486_v45 = vmul.f32 %v2958_v16, %v1398_v43  ;;  %v1345_v20 = vld [vmem:[%s3410_s25 + $0xd0] sm:$0xff] }
 0x21a   : > { %2324 = vst.msk [vmem:[%s3535_s21 + $0x38] sm:$0xff] %vm1045_vm0, %v2292_v21  ;;  %v2290_v25 = vsel %vm1723_vm1, %v3566_v1, %v2960_v56  ;;  %v1484_v27 = vmul.f32 %v2960_v56, %v1394_v22  ;;  %v1275_v29 = vmul.f32 1.442695, %v3587_v19  ;;  %v3603_v31 = vadd.f32 %v2734_v24, %v3506_v26  ;;  %v1163_v32 = vpop.f32.mrb[75].mxu0  ;;  %1551 = vrot.lane.b32.xlu0 %v1483_v18, %s3203_s27  ;;  %v1404_v13 = vpop.permute.xlu0 %1403  ;;  %v1346_v56 = vld [vmem:[%s3410_s25 + $0xd8] sm:$0xff] }
 0x21b   : > { %2322 = vst.msk [vmem:[%s3535_s21 + $0x28] sm:$0xff] %vm1045_vm0, %v2290_v25  ;;  %v1271_v34 = vmul.f32 1.442695, %v3595_v23  ;;  %v3610_v35 = vadd.f32 %v3506_v26, %v1163_v32  ;;  %v1406_v16 = vpop.permute.xlu1 %1405 }
 0x21c   : > { %2961 = vpow2.f32 %v1275_v29  ;;  %v1277_v38 = vmul.f32 1.442695, %v3603_v31  ;;  %1553 = vrot.lane.b32.xlu1 %v1484_v27, %s3203_s27 }
 0x21d   : > { %2963 = vpow2.f32 %v1271_v34  ;;  %v1273_v40 = vmul.f32 1.442695, %v3610_v35 }
 0x21e   : > { %2965 = vpow2.f32 %v1277_v38  ;;  %1423 = vrot.lane.b32.xlu0 %v1339_v37, %s3201_s26  ;;  %v1408_v25 = vpop.permute.xlu0 %1407 }
 0x21f   : > { %2967 = vpow2.f32 %v1273_v40 }
 0x220   : > { %1425 = vrot.lane.b32.xlu1 %v1340_v41, %s3201_s26  ;;  %v1410_v41 = vpop.permute.xlu1 %1409 }
 0x222   : > { %1555 = vrot.lane.b32.xlu0 %v1485_v44, %s3203_s27 }
 0x224   : > { %1557 = vrot.lane.b32.xlu1 %v1486_v45, %s3203_s27 }
 0x226   : > { %v2962_v48 = vpop.eup %2961  ;;  %1427 = vrot.lane.b32.xlu0 %v1341_v46, %s3201_s26 }
 0x227   : > { %v2964_v49 = vpop.eup %2963  ;;  %v2295_v50 = vsel %vm1723_vm1, %v3587_v19, %v2962_v48  ;;  %v2737_v53 = vpop.f32.mrb[0].mxu1  ;;  %v1489_v17 = vmul.f32 %v2962_v48, %v1404_v13 }
 0x228   : > { %v2966_v54 = vpop.eup %2965  ;;  %2327 = vst.msk [vmem:[%s3535_s21 + $0x50] sm:$0xff] %vm1045_vm0, %v2295_v50  ;;  %v2293_v55 = vsel %vm1723_vm1, %v3595_v23, %v2964_v49  ;;  %v1487_v58 = vmul.f32 %v2964_v49, %v1400_v52  ;;  %v3631_v59 = vadd.f32 %v2737_v53, %v3506_v26  ;;  %v1176_v60 = vpop.f32.mrb[1].mxu1  ;;  %1429 = vrot.lane.b32.xlu1 %v1342_v47, %s3201_s26  ;;  %v1347_v50 = vld [vmem:[%s3410_s25 + $0xe0] sm:$0xff] }
 0x229   : > { %v2968_v61 = vpop.eup %2967  ;;  %2325 = vst.msk [vmem:[%s3535_s21 + $0x40] sm:$0xff] %vm1045_vm0, %v2293_v55  ;;  %v2296_v63 = vsel %vm1723_vm1, %v3603_v31, %v2966_v54  ;;  %v3639_v2 = vadd.f32 %v3506_v26, %v1176_v60  ;;  %v2738_v3 = vpop.f32.mrb[2].mxu1  ;;  %v1490_v18 = vmul.f32 %v2966_v54, %v1406_v16 }
 0x22a   : > { %2328 = vst.msk [vmem:[%s3535_s21 + $0x58] sm:$0xff] %vm1045_vm0, %v2296_v63  ;;  %v2294_v4 = vsel %vm1723_vm1, %v3610_v35, %v2968_v61  ;;  %v1488_v5 = vmul.f32 %v2968_v61, %v1402_v0  ;;  %v1283_v6 = vmul.f32 1.442695, %v3631_v59  ;;  %v3647_v7 = vadd.f32 %v2738_v3, %v3506_v26  ;;  %v1179_v8 = vpop.f32.mrb[3].mxu1  ;;  %1559 = vrot.lane.b32.xlu0 %v1487_v58, %s3203_s27  ;;  %v1412_v55 = vpop.permute.xlu0 %1411  ;;  %v1348_v58 = vld [vmem:[%s3410_s25 + $0xe8] sm:$0xff]  ;;  %v1349_v3 = vld [vmem:[%s3410_s25 + $0xf0] sm:$0xff] }
 0x22b   : > { %2326 = vst.msk [vmem:[%s3535_s21 + $0x48] sm:$0xff] %vm1045_vm0, %v2294_v4  ;;  %v1279_v9 = vmul.f32 1.442695, %v3639_v2  ;;  %v3654_v10 = vadd.f32 %v3506_v26, %v1179_v8  ;;  %v1414_v61 = vpop.permute.xlu1 %1413  ;;  %v1350_v4 = vld [vmem:[%s3410_s25 + $0xf8] sm:$0xff] }
 0x22c   : > { %2969 = vpow2.f32 %v1283_v6  ;;  %v1285_v12 = vmul.f32 1.442695, %v3647_v7  ;;  %1561 = vrot.lane.b32.xlu1 %v1488_v5, %s3203_s27 }
 0x22d   : > { %2971 = vpow2.f32 %v1279_v9  ;;  %v1281_v14 = vmul.f32 1.442695, %v3654_v10 }
 0x22e   : > { %2973 = vpow2.f32 %v1285_v12  ;;  %1431 = vrot.lane.b32.xlu0 %v1343_v11, %s3201_s26 }
 0x22f   : > { %2975 = vpow2.f32 %v1281_v14 }
 0x230   : > { %1433 = vrot.lane.b32.xlu1 %v1344_v15, %s3201_s26 }
 0x232   : > { %1563 = vrot.lane.b32.xlu0 %v1489_v17, %s3203_s27 }
 0x234   : > { %1565 = vrot.lane.b32.xlu1 %v1490_v18, %s3203_s27 }
 0x236   : > { %v2970_v21 = vpop.eup %2969  ;;  %1435 = vrot.lane.b32.xlu0 %v1345_v20, %s3201_s26 }
 0x237   : > { %v2972_v22 = vpop.eup %2971  ;;  %v2299_v24 = vsel %vm1723_vm1, %v3631_v59, %v2970_v21  ;;  %v2741_v27 = vpop.f32.mrb[4].mxu1  ;;  %v1493_v63 = vmul.f32 %v2970_v21, %v1412_v55 }
 0x238   : > { %v2974_v29 = vpop.eup %2973  ;;  %2331 = vst.msk [vmem:[%s3535_s21 + $0x70] sm:$0xff] %vm1045_vm0, %v2299_v24  ;;  %v2297_v32 = vsel %vm1723_vm1, %v3639_v2, %v2972_v22  ;;  %v1491_v34 = vmul.f32 %v2972_v22, %v1408_v25  ;;  %1437 = vrot.lane.b32.xlu1 %v1346_v56, %s3201_s26  ;;  %v3676_v37 = vadd.f32 %v2741_v27, %v3506_v26  ;;  %v1192_v38 = vpop.f32.mrb[5].mxu1 }
 0x239   : > { %v2976_v39 = vpop.eup %2975  ;;  %2329 = vst.msk [vmem:[%s3535_s21 + $0x60] sm:$0xff] %vm1045_vm0, %v2297_v32  ;;  %v2300_v40 = vsel %vm1723_vm1, %v3647_v7, %v2974_v29  ;;  %v3683_v43 = vadd.f32 %v3506_v26, %v1192_v38  ;;  %v2742_v44 = vpop.f32.mrb[6].mxu1  ;;  %v1494_v0 = vmul.f32 %v2974_v29, %v1414_v61 }
 0x23a   : > { %2332 = vst.msk [vmem:[%s3535_s21 + $0x78] sm:$0xff] %vm1045_vm0, %v2300_v40  ;;  %v2298_v45 = vsel %vm1723_vm1, %v3654_v10, %v2976_v39  ;;  %v1492_v46 = vmul.f32 %v2976_v39, %v1410_v41  ;;  %1567 = vrot.lane.b32.xlu0 %v1491_v34, %s3203_s27  ;;  %v1291_v47 = vmul.f32 1.442695, %v3676_v37  ;;  %v3692_v48 = vadd.f32 %v2742_v44, %v3506_v26  ;;  %v1195_v49 = vpop.f32.mrb[7].mxu1 }
 0x23b   : > { %2330 = vst.msk [vmem:[%s3535_s21 + $0x68] sm:$0xff] %vm1045_vm0, %v2298_v45  ;;  %v1287_v52 = vmul.f32 1.442695, %v3683_v43  ;;  %v3699_v53 = vadd.f32 %v3506_v26, %v1195_v49 }
 0x23c   : > { %1569 = vrot.lane.b32.xlu1 %v1492_v46, %s3203_s27  ;;  %2977 = vpow2.f32 %v1291_v47  ;;  %v1293_v54 = vmul.f32 1.442695, %v3692_v48 }
 0x23d   : > { %2979 = vpow2.f32 %v1287_v52  ;;  %v1289_v60 = vmul.f32 1.442695, %v3699_v53 }
 0x23e   : > { %1439 = vrot.lane.b32.xlu0 %v1347_v50, %s3201_s26  ;;  %2981 = vpow2.f32 %v1293_v54 }
 0x23f   : > { %2983 = vpow2.f32 %v1289_v60 }
 0x240   : > { %1441 = vrot.lane.b32.xlu1 %v1348_v58, %s3201_s26 }
 0x242   : > { %1571 = vrot.lane.b32.xlu0 %v1493_v63, %s3203_s27 }
 0x244   : > { %1573 = vrot.lane.b32.xlu1 %v1494_v0, %s3203_s27 }
 0x246   : > { %v3711_v5 = vpop.eup %2977  ;;  %1443 = vrot.lane.b32.xlu0 %v1349_v3, %s3201_s26 }
 0x247   : > { %v3714_v6 = vpop.eup %2979  ;;  %v2303_v8 = vsel %vm1723_vm1, %v3676_v37, %v3711_v5  ;;  %v2745_v9 = vpop.f32.mrb[8].mxu1 }
 0x248   : > { %v3719_v11 = vpop.eup %2981  ;;  %1445 = vrot.lane.b32.xlu1 %v1350_v4, %s3201_s26  ;;  %2335 = vst.msk [vmem:[%s3535_s21 + $0x90] sm:$0xff] %vm1045_vm0, %v2303_v8  ;;  %v2301_v12 = vsel %vm1723_vm1, %v3683_v43, %v3714_v6  ;;  %v3728_v13 = vadd.f32 %v2745_v9, %v3506_v26  ;;  %v1208_v14 = vpop.f32.mrb[9].mxu1 }
 0x249   : > { %v3730_v15 = vpop.eup %2983  ;;  %2333 = vst.msk [vmem:[%s3535_s21 + $0x80] sm:$0xff] %vm1045_vm0, %v2301_v12  ;;  %v2304_v16 = vsel %vm1723_vm1, %v3692_v48, %v3719_v11  ;;  %v3738_v17 = vadd.f32 %v3506_v26, %v1208_v14  ;;  %v2746_v18 = vpop.f32.mrb[10].mxu1 }
 0x24a   : > { %2336 = vst.msk [vmem:[%s3535_s21 + $0x98] sm:$0xff] %vm1045_vm0, %v2304_v16  ;;  %v2302_v20 = vsel %vm1723_vm1, %v3699_v53, %v3730_v15  ;;  %v1299_v56 = vmul.f32 1.442695, %v3728_v13  ;;  %v3747_v21 = vadd.f32 %v2746_v18, %v3506_v26  ;;  %v1211_v22 = vpop.f32.mrb[11].mxu1 }
 0x24b   : > { %2334 = vst.msk [vmem:[%s3535_s21 + $0x88] sm:$0xff] %vm1045_vm0, %v2302_v20  ;;  %v1295_v24 = vmul.f32 1.442695, %v3738_v17  ;;  %v3753_v25 = vadd.f32 %v3506_v26, %v1211_v22 }
 0x24c   : > { %2985 = vpow2.f32 %v1299_v56  ;;  %v1301_v27 = vmul.f32 1.442695, %v3747_v21 }
 0x24d   : > { %2987 = vpow2.f32 %v1295_v24  ;;  %v1297_v29 = vmul.f32 1.442695, %v3753_v25 }
 0x24e   : > { %2989 = vpow2.f32 %v1301_v27 }
 0x24f   : > { %2991 = vpow2.f32 %v1297_v29 }
 0x256   : > { %v3757_v32 = vpop.eup %2985 }
 0x257   : > { %v3759_v34 = vpop.eup %2987  ;;  %v2307_v38 = vsel %vm1723_vm1, %v3728_v13, %v3757_v32  ;;  %v2749_v39 = vpop.f32.mrb[12].mxu1 }
 0x258   : > { %v3764_v40 = vpop.eup %2989  ;;  %2339 = vst.msk [vmem:[%s3535_s21 + $0xb0] sm:$0xff] %vm1045_vm0, %v2307_v38  ;;  %v2305_v41 = vsel %vm1723_vm1, %v3738_v17, %v3759_v34  ;;  %v3772_v44 = vadd.f32 %v2749_v39, %v3506_v26  ;;  %v1224_v45 = vpop.f32.mrb[13].mxu1 }
 0x259   : > { %v3774_v46 = vpop.eup %2991  ;;  %2337 = vst.msk [vmem:[%s3535_s21 + $0xa0] sm:$0xff] %vm1045_vm0, %v2305_v41  ;;  %v2308_v47 = vsel %vm1723_vm1, %v3747_v21, %v3764_v40  ;;  %v3782_v49 = vadd.f32 %v3506_v26, %v1224_v45  ;;  %v2750_v50 = vpop.f32.mrb[14].mxu1 }
 0x25a   : > { %2340 = vst.msk [vmem:[%s3535_s21 + $0xb8] sm:$0xff] %vm1045_vm0, %v2308_v47  ;;  %v2306_v52 = vsel %vm1723_vm1, %v3753_v25, %v3774_v46  ;;  %v1307_v54 = vmul.f32 1.442695, %v3772_v44  ;;  %v3791_v55 = vadd.f32 %v2750_v50, %v3506_v26  ;;  %v1227_v58 = vpop.f32.mrb[15].mxu1 }
 0x25b   : > { %2338 = vst.msk [vmem:[%s3535_s21 + $0xa8] sm:$0xff] %vm1045_vm0, %v2306_v52  ;;  %v1303_v60 = vmul.f32 1.442695, %v3782_v49  ;;  %v3797_v61 = vadd.f32 %v3506_v26, %v1227_v58 }
 0x25c   : > { %2993 = vpow2.f32 %v1307_v54  ;;  %v1309_v63 = vmul.f32 1.442695, %v3791_v55 }
 0x25d   : > { %2995 = vpow2.f32 %v1303_v60  ;;  %v1305_v0 = vmul.f32 1.442695, %v3797_v61 }
 0x25e   : > { %2997 = vpow2.f32 %v1309_v63 }
 0x25f   : > { %2999 = vpow2.f32 %v1305_v0 }
 0x266   : > { %v3801_v3 = vpop.eup %2993 }
 0x267   : > { %v3803_v4 = vpop.eup %2995  ;;  %v2311_v8 = vsel %vm1723_vm1, %v3772_v44, %v3801_v3  ;;  %v2753_v9 = vpop.f32.mrb[16].mxu1 }
 0x268   : > { %v3808_v12 = vpop.eup %2997  ;;  %2343 = vst.msk [vmem:[%s3535_s21 + $0xd0] sm:$0xff] %vm1045_vm0, %v2311_v8  ;;  %v2309_v14 = vsel %vm1723_vm1, %v3782_v49, %v3803_v4  ;;  %v3816_v16 = vadd.f32 %v2753_v9, %v3506_v26  ;;  %v1240_v18 = vpop.f32.mrb[17].mxu1 }
 0x269   : > { %v3818_v20 = vpop.eup %2999  ;;  %2341 = vst.msk [vmem:[%s3535_s21 + $0xc0] sm:$0xff] %vm1045_vm0, %v2309_v14  ;;  %v2312_v56 = vsel %vm1723_vm1, %v3791_v55, %v3808_v12  ;;  %v3826_v22 = vadd.f32 %v3506_v26, %v1240_v18  ;;  %v2754_v24 = vpop.f32.mrb[18].mxu1 }
 0x26a   : > { %2344 = vst.msk [vmem:[%s3535_s21 + $0xd8] sm:$0xff] %vm1045_vm0, %v2312_v56  ;;  %v2310_v27 = vsel %vm1723_vm1, %v3797_v61, %v3818_v20  ;;  %v1315_v29 = vmul.f32 1.442695, %v3816_v16  ;;  %v3835_v38 = vadd.f32 %v2754_v24, %v3506_v26  ;;  %v1243_v39 = vpop.f32.mrb[19].mxu1 }
 0x26b   : > { %2342 = vst.msk [vmem:[%s3535_s21 + $0xc8] sm:$0xff] %vm1045_vm0, %v2310_v27  ;;  %v1311_v41 = vmul.f32 1.442695, %v3826_v22  ;;  %v3841_v45 = vadd.f32 %v3506_v26, %v1243_v39 }
 0x26c   : > { %3001 = vpow2.f32 %v1315_v29  ;;  %v1317_v47 = vmul.f32 1.442695, %v3835_v38 }
 0x26d   : > { %3003 = vpow2.f32 %v1311_v41  ;;  %v1313_v50 = vmul.f32 1.442695, %v3841_v45 }
 0x26e   : > { %3005 = vpow2.f32 %v1317_v47 }
 0x26f   : > { %3007 = vpow2.f32 %v1313_v50 }
 0x276   : > { %v3845_v52 = vpop.eup %3001 }
 0x277   : > { %v3847_v54 = vpop.eup %3003  ;;  %v2315_v58 = vsel %vm1723_vm1, %v3816_v16, %v3845_v52 }
 0x278   : > { %v3852_v26 = vpop.eup %3005  ;;  %2347 = vst.msk [vmem:[%s3535_s21 + $0xf0] sm:$0xff] %vm1045_vm0, %v2315_v58  ;;  %v2313_v60 = vsel %vm1723_vm1, %v3826_v22, %v3847_v54 }
 0x279   : > { %v3859_v63 = vpop.eup %3007  ;;  %2345 = vst.msk [vmem:[%s3535_s21 + $0xe0] sm:$0xff] %vm1045_vm0, %v2313_v60  ;;  %v2316_v0 = vsel %vm1723_vm1, %v3835_v38, %v3852_v26 }
 0x27a   : > { %2348 = vst.msk [vmem:[%s3535_s21 + $0xf8] sm:$0xff] %vm1045_vm0, %v2316_v0  ;;  %v2314_v8 = vsel %vm1723_vm1, %v3841_v45, %v3859_v63 }
 0x27b   : > { %2346 = vst.msk [vmem:[%s3535_s21 + $0xe8] sm:$0xff] %vm1045_vm0, %v2314_v8  ;;  %s3137_s21 = scalar_lea.vmem %s4112_s28, 8192 }
 0x27c   : > { %v1544_v9 = vpop.permute.xlu0 %1543  ;;  %p3138_p11 = scmp.ne.s32.totalorder %s4112_s28, %s3137_s21 }
 0x27d   : > { %v1639_v18 = vadd.f32 %v1544_v9, %v3512_v30 }
 0x27e   : > { %v1546_v14 = vpop.permute.xlu1 %1545  ;;  %p3139_p12 = pnand %p3138_p11, %p3295_p5 }
 0x27f   : > { %v1640_v56 = vadd.f32 %v1546_v14, %v3520_v36 }
 0x280   : > { %v1416_v24 = vpop.permute.xlu0 %1415  ;;  %p3140_p13 = pneg %p3139_p12 }
 0x281   : > { %v1671_v27 = vpack.c.bf16 %v1640_v56, %v1639_v18  ;;  %v1495_v29 = vmul.f32 %v3714_v6, %v1416_v24 }
 0x282   : > { %v1418_v39 = vpop.permute.xlu1 %1417 }
 0x283   : > { %v1496_v41 = vmul.f32 %v3730_v15, %v1418_v39  ;;  %2558 = vmatmul.mubr.msk.bf16.vlgmr.msra.gmra.mrb[20].mxu1 %vm1723_vm1, %v1671_v27  ;;  %1575 = vrot.lane.b32.xlu0 %v1495_v29, %s3203_s27 }
 0x284   : > { %v1548_v47 = vpop.permute.xlu0 %1547  ;;  %1814 = vmatprep.mubr.bf16.mxu1 %v3202_v42 }
 0x285   : > { %1577 = vrot.lane.b32.xlu1 %v1496_v41, %s3203_s27  ;;  %v1641_v30 = vadd.f32 %v1548_v47, %v3509_v28 }
 0x286   : > { %v1550_v50 = vpop.permute.xlu1 %1549 }
 0x287   : > { %v1642_v36 = vadd.f32 %v1550_v50, %v3516_v33 }
 0x288   : > { %v1420_v58 = vpop.permute.xlu0 %1419 }
 0x289   : > { %v1672_v60 = vpack.c.bf16 %v1642_v36, %v1641_v30  ;;  %v1497_v6 = vmul.f32 %v3711_v5, %v1420_v58 }
 0x28a   : > { %v1422_v0 = vpop.permute.xlu1 %1421 }
 0x28b   : > { %v1498_v15 = vmul.f32 %v3719_v11, %v1422_v0  ;;  %2559 = vmatmul.mubr.msk.bf16.gmra.mrb[24].mxu1 %vm1723_vm1, %v1672_v60  ;;  %1579 = vrot.lane.b32.xlu0 %v1497_v6, %s3203_s27 }
 0x28c   : > { %v1552_v8 = vpop.permute.xlu0 %1551  ;;  %1824 = vmatprep.mubr.bf16.mxu1 %v3202_v42 }
 0x28d   : > { %1581 = vrot.lane.b32.xlu1 %v1498_v15, %s3203_s27  ;;  %v1643_v28 = vadd.f32 %v1552_v8, %v3551_v57 }
 0x28e   : > { %v1554_v9 = vpop.permute.xlu1 %1553 }
 0x28f   : > { %v1644_v33 = vadd.f32 %v1554_v9, %v3566_v1 }
 0x290   : > { %v1424_v14 = vpop.permute.xlu0 %1423 }
 0x291   : > { %v1673_v18 = vpack.c.bf16 %v1644_v33, %v1643_v28  ;;  %v1499_v5 = vmul.f32 %v3759_v34, %v1424_v14 }
 0x292   : > { %v1426_v56 = vpop.permute.xlu1 %1425 }
 0x293   : > { %v1500_v11 = vmul.f32 %v3774_v46, %v1426_v56  ;;  %2560 = vmatmul.mubr.msk.bf16.gmra.mrb[28].mxu1 %vm1723_vm1, %v1673_v18  ;;  %1583 = vrot.lane.b32.xlu0 %v1499_v5, %s3203_s27 }
 0x294   : > { %v1556_v24 = vpop.permute.xlu0 %1555  ;;  %1834 = vmatprep.mubr.bf16.mxu1 %v3202_v42 }
 0x295   : > { %1585 = vrot.lane.b32.xlu1 %v1500_v11, %s3203_s27  ;;  %v1645_v57 = vadd.f32 %v1556_v24, %v3544_v51 }
 0x296   : > { %v1558_v27 = vpop.permute.xlu1 %1557 }
 0x297   : > { %v1646_v1 = vadd.f32 %v1558_v27, %v3559_v62 }
 0x298   : > { %v1428_v29 = vpop.permute.xlu0 %1427 }
 0x299   : > { %v1674_v39 = vpack.c.bf16 %v1646_v1, %v1645_v57  ;;  %v1501_v34 = vmul.f32 %v3757_v32, %v1428_v29 }
 0x29a   : > { %v1430_v41 = vpop.permute.xlu1 %1429 }
 0x29b   : > { %v1502_v46 = vmul.f32 %v3764_v40, %v1430_v41  ;;  %2561 = vmatmul.mubr.msk.bf16.gmra.mrb[32].mxu1 %vm1723_vm1, %v1674_v39  ;;  %1587 = vrot.lane.b32.xlu0 %v1501_v34, %s3203_s27 }
 0x29c   : > { %v1560_v47 = vpop.permute.xlu0 %1559  ;;  %1844 = vmatprep.mubr.bf16.mxu1 %v3202_v42 }
 0x29d   : > { %1589 = vrot.lane.b32.xlu1 %v1502_v46, %s3203_s27  ;;  %v1647_v51 = vadd.f32 %v1560_v47, %v3595_v23 }
 0x29e   : > { %v1562_v50 = vpop.permute.xlu1 %1561 }
 0x29f   : > { %v1648_v62 = vadd.f32 %v1562_v50, %v3610_v35 }
 0x2a0   : > { %v1432_v30 = vpop.permute.xlu0 %1431 }
 0x2a1   : > { %v1675_v36 = vpack.c.bf16 %v1648_v62, %v1647_v51  ;;  %v1503_v32 = vmul.f32 %v3803_v4, %v1432_v30 }
 0x2a2   : > { %v1434_v58 = vpop.permute.xlu1 %1433 }
 0x2a3   : > { %v1504_v40 = vmul.f32 %v3818_v20, %v1434_v58  ;;  %2562 = vmatmul.mubr.msk.bf16.gmra.mrb[36].mxu1 %vm1723_vm1, %v1675_v36  ;;  %1591 = vrot.lane.b32.xlu0 %v1503_v32, %s3203_s27 }
 0x2a4   : > { %v1564_v60 = vpop.permute.xlu0 %1563  ;;  %1854 = vmatprep.mubr.bf16.mxu1 %v3202_v42 }
 0x2a5   : > { %1593 = vrot.lane.b32.xlu1 %v1504_v40, %s3203_s27  ;;  %v1649_v23 = vadd.f32 %v1564_v60, %v3587_v19 }
 0x2a6   : > { %v1566_v6 = vpop.permute.xlu1 %1565 }
 0x2a7   : > { %v1650_v35 = vadd.f32 %v1566_v6, %v3603_v31 }
 0x2a8   : > { %v1436_v0 = vpop.permute.xlu0 %1435 }
 0x2a9   : > { %v1676_v15 = vpack.c.bf16 %v1650_v35, %v1649_v23  ;;  %v1505_v4 = vmul.f32 %v3801_v3, %v1436_v0 }
 0x2aa   : > { %v1438_v8 = vpop.permute.xlu1 %1437 }
 0x2ab   : > { %v1506_v20 = vmul.f32 %v3808_v12, %v1438_v8  ;;  %2563 = vmatmul.mubr.msk.bf16.gmra.mrb[40].mxu1 %vm1723_vm1, %v1676_v15  ;;  %1595 = vrot.lane.b32.xlu0 %v1505_v4, %s3203_s27 }
 0x2ac   : > { %v1568_v9 = vpop.permute.xlu0 %1567  ;;  %1864 = vmatprep.mubr.bf16.mxu1 %v3202_v42 }
 0x2ad   : > { %1597 = vrot.lane.b32.xlu1 %v1506_v20, %s3203_s27  ;;  %v1651_v19 = vadd.f32 %v1568_v9, %v3639_v2  ;;  %v1693_v20 = vlaneseq }
 0x2ae   : > { %v1570_v28 = vpop.permute.xlu1 %1569 }
 0x2af   : > { %v1652_v31 = vadd.f32 %v1570_v28, %v3654_v10  ;;  %v1694_v9 = vshrl.u32 %v1693_v20, 7 }
 0x2b0   : > { %v1440_v33 = vpop.permute.xlu0 %1439 }
 0x2b1   : > { %v1677_v14 = vpack.c.bf16 %v1652_v31, %v1651_v19  ;;  %v1507_v3 = vmul.f32 %v3847_v54, %v1440_v33  ;;  %v1695_v28 = vsub.s32 0, %v1694_v9 }
 0x2b2   : > { %v1442_v18 = vpop.permute.xlu1 %1441 }
 0x2b3   : > { %v1508_v12 = vmul.f32 %v3859_v63, %v1442_v18  ;;  %2564 = vmatmul.mubr.msk.bf16.gmra.mrb[44].mxu1 %vm1723_vm1, %v1677_v14  ;;  %1599 = vrot.lane.b32.xlu0 %v1507_v3, %s3203_s27 }
 0x2b4   : > { %v1572_v5 = vpop.permute.xlu0 %1571  ;;  %1874 = vmatprep.mubr.bf16.mxu1 %v3202_v42 }
 0x2b5   : > { %1601 = vrot.lane.b32.xlu1 %v1508_v12, %s3203_s27  ;;  %v1653_v2 = vadd.f32 %v1572_v5, %v3631_v59 }
 0x2b6   : > { %v1574_v56 = vpop.permute.xlu1 %1573 }
 0x2b7   : > { %v1654_v10 = vadd.f32 %v1574_v56, %v3647_v7 }
 0x2b8   : > { %v1444_v11 = vpop.permute.xlu0 %1443 }
 0x2b9   : > { %v1678_v24 = vpack.c.bf16 %v1654_v10, %v1653_v2  ;;  %v1509_v54 = vmul.f32 %v3845_v52, %v1444_v11 }
 0x2ba   : > { %v1446_v27 = vpop.permute.xlu1 %1445 }
 0x2bb   : > { %v1510_v63 = vmul.f32 %v3852_v26, %v1446_v27  ;;  %2565 = vmatmul.mubr.msk.bf16.gmra.mrb[48].mxu1 %vm1723_vm1, %v1678_v24  ;;  %1603 = vrot.lane.b32.xlu0 %v1509_v54, %s3203_s27 }
 0x2bc   : > { %1884 = vmatprep.mubr.bf16.mxu1 %v3202_v42 }
 0x2bd   : > { %1605 = vrot.lane.b32.xlu1 %v1510_v63, %s3203_s27  ;;  %s3204_s27 = smov [#allocation2]  }
 0x2be   : > { %s3141_s25 = sshll.u32 %s3204_s27, 4  ;;  %s3142_s25 = int_to_ptr.vmem [resolvable:$false] %s3141_s25 }
 0x2bf   : > { %s3143_s26 = scalar_lea.vmem %s3142_s25, 16384  ;;  %p3144_p0 = scmp.lt.s32.totalorder %s4112_s28, %s3142_s25 }
 0x2c0   : > { %p3145_p1 = scmp.lt.s32.totalorder %s3143_s26, %s3137_s21 }
 0x2c2   : > { %p3146_p2 = por %p3145_p1, %p3144_p0 }
 0x2c4   : > { %p3147_p3 = pnand %p3146_p2, %p3140_p13 }
 0x2f5   : > { %v1576_v57 = vpop.permute.xlu0 %1575 }
 0x2f6   : > { %v1655_v59 = vadd.f32 %v1576_v57, %v3683_v43 }
 0x2f7   : > { %v1578_v1 = vpop.permute.xlu1 %1577 }
 0x2f8   : > { %v1656_v7 = vadd.f32 %v1578_v1, %v3699_v53 }
 0x2fa   : > { %v1679_v29 = vpack.c.bf16 %v1656_v7, %v1655_v59 }
 0x2fc   : > { %2566 = vmatmul.mubr.msk.bf16.gmra.mrb[52].mxu1 %vm1723_vm1, %v1679_v29 }
 0x2fd   : > { %v1580_v52 = vpop.permute.xlu0 %1579  ;;  %1894 = vmatprep.mubr.bf16.mxu1 %v3202_v42 }
 0x2fe   : > { %v1657_v39 = vadd.f32 %v1580_v52, %v3676_v37 }
 0x2ff   : > { %v1582_v26 = vpop.permute.xlu1 %1581 }
 0x300   : > { %v1658_v34 = vadd.f32 %v1582_v26, %v3692_v48 }
 0x302   : > { %v1680_v41 = vpack.c.bf16 %v1658_v34, %v1657_v39 }
 0x304   : > { %2567 = vmatmul.mubr.msk.bf16.gmra.mrb[56].mxu1 %vm1723_vm1, %v1680_v41 }
 0x305   : > { %v1584_v46 = vpop.permute.xlu0 %1583  ;;  %1904 = vmatprep.mubr.bf16.mxu1 %v3202_v42 }
 0x306   : > { %v1659_v53 = vadd.f32 %v1584_v46, %v3738_v17 }
 0x307   : > { %v1586_v43 = vpop.permute.xlu1 %1585 }
 0x308   : > { %v1660_v47 = vadd.f32 %v1586_v43, %v3753_v25 }
 0x30a   : > { %v1681_v50 = vpack.c.bf16 %v1660_v47, %v1659_v53 }
 0x30c   : > { %2568 = vmatmul.mubr.msk.bf16.gmra.mrb[60].mxu1 %vm1723_vm1, %v1681_v50 }
 0x30d   : > { %v1588_v51 = vpop.permute.xlu0 %1587  ;;  %1914 = vmatprep.mubr.bf16.mxu1 %v3202_v42 }
 0x30e   : > { %v1661_v48 = vadd.f32 %v1588_v51, %v3728_v13 }
 0x30f   : > { %v1590_v37 = vpop.permute.xlu1 %1589 }
 0x310   : > { %v1662_v62 = vadd.f32 %v1590_v37, %v3747_v21 }
 0x312   : > { %v1682_v30 = vpack.c.bf16 %v1662_v62, %v1661_v48 }
 0x314   : > { %2569 = vmatmul.mubr.msk.bf16.gmra.mrb[64].mxu1 %vm1723_vm1, %v1682_v30 }
 0x315   : > { %v1592_v36 = vpop.permute.xlu0 %1591  ;;  %1924 = vmatprep.mubr.bf16.mxu1 %v3202_v42 }
 0x316   : > { %v1663_v25 = vadd.f32 %v1592_v36, %v3782_v49 }
 0x317   : > { %v1594_v17 = vpop.permute.xlu1 %1593 }
 0x318   : > { %v1664_v32 = vadd.f32 %v1594_v17, %v3797_v61 }
 0x31a   : > { %v1683_v58 = vpack.c.bf16 %v1664_v32, %v1663_v25 }
 0x31c   : > { %2570 = vmatmul.mubr.msk.bf16.gmra.mrb[68].mxu1 %vm1723_vm1, %v1683_v58 }
 0x31d   : > { %v1596_v40 = vpop.permute.xlu0 %1595  ;;  %1934 = vmatprep.mubr.bf16.mxu1 %v3202_v42 }
 0x31e   : > { %v1665_v21 = vadd.f32 %v1596_v40, %v3772_v44 }
 0x31f   : > { %v1598_v13 = vpop.permute.xlu1 %1597 }
 0x320   : > { %v1666_v60 = vadd.f32 %v1598_v13, %v3791_v55 }
 0x322   : > { %v1684_v6 = vpack.c.bf16 %v1666_v60, %v1665_v21 }
 0x324   : > { %2571 = vmatmul.mubr.msk.bf16.gmra.mrb[72].mxu1 %vm1723_vm1, %v1684_v6 }
 0x325   : > { %v1600_v23 = vpop.permute.xlu0 %1599  ;;  %1944 = vmatprep.mubr.bf16.mxu1 %v3202_v42 }
 0x326   : > { %v1667_v61 = vadd.f32 %v1600_v23, %v3826_v22  ;;  %v1691_v22 = vld [vmem:[%s4166_s6] sm:$0x3] }
 0x327   : > { %v1602_v49 = vpop.permute.xlu1 %1601  ;;  %v3971_v19 = vrot.slane %v1691_v22, %v1695_v28 }
 0x328   : > { %v1668_v35 = vadd.f32 %v1602_v49, %v3841_v45  ;;  %v1699_v45 = vsub.s32 1, %v1694_v9 }
 0x32a   : > { %v1685_v0 = vpack.c.bf16 %v1668_v35, %v1667_v61  ;;  %v3973_v31 = vrot.slane %v1691_v22, %v1699_v45 }
 0x32c   : > { %2572 = vmatmul.mubr.msk.bf16.gmra.mrb[76].mxu1 %vm1723_vm1, %v1685_v0 }
 0x32d   : > { %v1604_v15 = vpop.permute.xlu0 %1603  ;;  %1954 = vmatprep.mubr.bf16.mxu1 %v3202_v42 }
 0x32e   : > { %v1669_v55 = vadd.f32 %v1604_v15, %v3816_v16 }
 0x32f   : > { %v1606_v44 = vpop.permute.xlu1 %1605 }
 0x330   : > { %v1670_v4 = vadd.f32 %v1606_v44, %v3835_v38 }
 0x332   : > { %v1686_v8 = vpack.c.bf16 %v1670_v4, %v1669_v55 }
 0x334   : > { %2573 = vmatmul.mubr.msk.bf16.gmra.mrb[80].mxu1 %vm1723_vm1, %v1686_v8 }
 0x356   : > { %v1806_v42 = vpop.f32.mrb[20].mxu1 }
 0x357   : > { %v1807_v16 = vadd.f32 %v1806_v42, %v3971_v19  ;;  %v1808_v33 = vpop.f32.mrb[21].mxu1 }
 0x358   : > { %v1809_v38 = vadd.f32 %v1808_v33, %v3973_v31  ;;  %v1810_v14 = vpop.f32.mrb[22].mxu1 }
 0x359   : > { %v1965_v3 = vmul.f32 0.5, %v1807_v16  ;;  %v1811_v18 = vadd.f32 %v1810_v14, %v3971_v19  ;;  %v1812_v12 = vpop.f32.mrb[23].mxu1 }
 0x35a   : > { %v1966_v5 = vmul.f32 0.5, %v1809_v38  ;;  %v1813_v56 = vadd.f32 %v1812_v12, %v3973_v31 }
 0x35b   : > { %3009 = vtanh.f32 %v1965_v3  ;;  %v1967_v2 = vmul.f32 0.5, %v1811_v18 }
 0x35c   : > { %3011 = vtanh.f32 %v1966_v5  ;;  %v1968_v10 = vmul.f32 0.5, %v1813_v56 }
 0x35d   : > { %3013 = vtanh.f32 %v1967_v2 }
 0x35e   : > { %3015 = vtanh.f32 %v1968_v10  ;;  %v1816_v11 = vpop.f32.mrb[24].mxu1 }
 0x35f   : > { %v1817_v24 = vadd.f32 %v1816_v11, %v3971_v19  ;;  %v1818_v54 = vpop.f32.mrb[25].mxu1 }
 0x360   : > { %v1819_v27 = vadd.f32 %v1818_v54, %v3973_v31  ;;  %v1820_v63 = vpop.f32.mrb[26].mxu1 }
 0x361   : > { %v1969_v57 = vmul.f32 0.5, %v1817_v24  ;;  %v1821_v1 = vadd.f32 %v1820_v63, %v3971_v19  ;;  %v1822_v59 = vpop.f32.mrb[27].mxu1 }
 0x362   : > { %v1970_v7 = vmul.f32 0.5, %v1819_v27  ;;  %v1823_v29 = vadd.f32 %v1822_v59, %v3973_v31 }
 0x363   : > { %3017 = vtanh.f32 %v1969_v57  ;;  %v1971_v52 = vmul.f32 0.5, %v1821_v1 }
 0x364   : > { %3019 = vtanh.f32 %v1970_v7  ;;  %v1972_v26 = vmul.f32 0.5, %v1823_v29 }
 0x365   : > { %v3010_v39 = vpop.eup %3009  ;;  %3021 = vtanh.f32 %v1971_v52 }
 0x366   : > { %v3012_v34 = vpop.eup %3011  ;;  %v2093_v41 = vmul.f32 0.5, %v3010_v39  ;;  %3023 = vtanh.f32 %v1972_v26  ;;  %v1826_v46 = vpop.f32.mrb[28].mxu1 }
 0x367   : > { %v3014_v43 = vpop.eup %3013  ;;  %v2094_v53 = vmul.f32 0.5, %v3012_v34  ;;  %v1827_v47 = vadd.f32 %v1826_v46, %v3971_v19  ;;  %v1828_v50 = vpop.f32.mrb[29].mxu1 }
 0x368   : > { %v3016_v51 = vpop.eup %3015  ;;  %v2157_v37 = vadd.f32 0.5, %v2093_v41  ;;  %v2095_v48 = vmul.f32 0.5, %v3014_v43  ;;  %v1829_v62 = vadd.f32 %v1828_v50, %v3973_v31  ;;  %v1830_v30 = vpop.f32.mrb[30].mxu1 }
 0x369   : > { %v2158_v36 = vadd.f32 0.5, %v2094_v53  ;;  %v2096_v17 = vmul.f32 0.5, %v3016_v51  ;;  %v1973_v25 = vmul.f32 0.5, %v1827_v47  ;;  %v1831_v32 = vadd.f32 %v1830_v30, %v3971_v19  ;;  %v1832_v58 = vpop.f32.mrb[31].mxu1 }
 0x36a   : > { %2221 = vst [vmem:[%s3989_s24] sm:$0xff] %v2157_v37  ;;  %v2159_v40 = vadd.f32 0.5, %v2095_v48  ;;  %v1974_v13 = vmul.f32 0.5, %v1829_v62  ;;  %v1833_v21 = vadd.f32 %v1832_v58, %v3973_v31 }
 0x36b   : > { %2222 = vst [vmem:[%s3989_s24 + $0x8] sm:$0xff] %v2158_v36  ;;  %v2160_v60 = vadd.f32 0.5, %v2096_v17  ;;  %3025 = vtanh.f32 %v1973_v25  ;;  %v1975_v6 = vmul.f32 0.5, %v1831_v32 }
 0x36c   : > { %2223 = vst [vmem:[%s3989_s24 + $0x10] sm:$0xff] %v2159_v40  ;;  %3027 = vtanh.f32 %v1974_v13  ;;  %v1976_v23 = vmul.f32 0.5, %v1833_v21 }
 0x36d   : > { %v3018_v49 = vpop.eup %3017  ;;  %2224 = vst [vmem:[%s3989_s24 + $0x18] sm:$0xff] %v2160_v60  ;;  %3029 = vtanh.f32 %v1975_v6 }
 0x36e   : > { %v3020_v61 = vpop.eup %3019  ;;  %v2097_v35 = vmul.f32 0.5, %v3018_v49  ;;  %3031 = vtanh.f32 %v1976_v23  ;;  %v1836_v0 = vpop.f32.mrb[32].mxu1 }
 0x36f   : > { %v3022_v15 = vpop.eup %3021  ;;  %v2098_v44 = vmul.f32 0.5, %v3020_v61  ;;  %v1837_v55 = vadd.f32 %v1836_v0, %v3971_v19  ;;  %v1838_v4 = vpop.f32.mrb[33].mxu1 }
 0x370   : > { %v3024_v8 = vpop.eup %3023  ;;  %v2161_v20 = vadd.f32 0.5, %v2097_v35  ;;  %v2099_v9 = vmul.f32 0.5, %v3022_v15  ;;  %v1839_v28 = vadd.f32 %v1838_v4, %v3973_v31  ;;  %v1840_v22 = vpop.f32.mrb[34].mxu1 }
 0x371   : > { %v2162_v45 = vadd.f32 0.5, %v2098_v44  ;;  %v2100_v42 = vmul.f32 0.5, %v3024_v8  ;;  %v1977_v16 = vmul.f32 0.5, %v1837_v55  ;;  %v1841_v33 = vadd.f32 %v1840_v22, %v3971_v19  ;;  %v1842_v38 = vpop.f32.mrb[35].mxu1 }
 0x372   : > { %2225 = vst [vmem:[%s3989_s24 + $0x20] sm:$0xff] %v2161_v20  ;;  %v2163_v14 = vadd.f32 0.5, %v2099_v9  ;;  %v1978_v3 = vmul.f32 0.5, %v1839_v28  ;;  %v1843_v18 = vadd.f32 %v1842_v38, %v3973_v31 }
 0x373   : > { %2226 = vst [vmem:[%s3989_s24 + $0x28] sm:$0xff] %v2162_v45  ;;  %v2164_v12 = vadd.f32 0.5, %v2100_v42  ;;  %3033 = vtanh.f32 %v1977_v16  ;;  %v1979_v5 = vmul.f32 0.5, %v1841_v33 }
 0x374   : > { %2227 = vst [vmem:[%s3989_s24 + $0x30] sm:$0xff] %v2163_v14  ;;  %3035 = vtanh.f32 %v1978_v3  ;;  %v1980_v56 = vmul.f32 0.5, %v1843_v18 }
 0x375   : > { %v3026_v2 = vpop.eup %3025  ;;  %2228 = vst [vmem:[%s3989_s24 + $0x38] sm:$0xff] %v2164_v12  ;;  %3037 = vtanh.f32 %v1979_v5 }
 0x376   : > { %v3028_v10 = vpop.eup %3027  ;;  %v2101_v11 = vmul.f32 0.5, %v3026_v2  ;;  %3039 = vtanh.f32 %v1980_v56  ;;  %v1846_v24 = vpop.f32.mrb[36].mxu1 }
 0x377   : > { %v3030_v54 = vpop.eup %3029  ;;  %v2102_v27 = vmul.f32 0.5, %v3028_v10  ;;  %v1847_v63 = vadd.f32 %v1846_v24, %v3971_v19  ;;  %v1848_v57 = vpop.f32.mrb[37].mxu1 }
 0x378   : > { %v3032_v1 = vpop.eup %3031  ;;  %v2165_v59 = vadd.f32 0.5, %v2101_v11  ;;  %v2103_v7 = vmul.f32 0.5, %v3030_v54  ;;  %v1849_v29 = vadd.f32 %v1848_v57, %v3973_v31  ;;  %v1850_v52 = vpop.f32.mrb[38].mxu1 }
 0x379   : > { %v2166_v26 = vadd.f32 0.5, %v2102_v27  ;;  %v2104_v39 = vmul.f32 0.5, %v3032_v1  ;;  %v1981_v34 = vmul.f32 0.5, %v1847_v63  ;;  %v1851_v41 = vadd.f32 %v1850_v52, %v3971_v19  ;;  %v1852_v46 = vpop.f32.mrb[39].mxu1 }
 0x37a   : > { %2229 = vst [vmem:[%s3989_s24 + $0x40] sm:$0xff] %v2165_v59  ;;  %v2167_v43 = vadd.f32 0.5, %v2103_v7  ;;  %v1982_v53 = vmul.f32 0.5, %v1849_v29  ;;  %v1853_v47 = vadd.f32 %v1852_v46, %v3973_v31 }
 0x37b   : > { %2230 = vst [vmem:[%s3989_s24 + $0x48] sm:$0xff] %v2166_v26  ;;  %v2168_v50 = vadd.f32 0.5, %v2104_v39  ;;  %3041 = vtanh.f32 %v1981_v34  ;;  %v1983_v51 = vmul.f32 0.5, %v1851_v41 }
 0x37c   : > { %2231 = vst [vmem:[%s3989_s24 + $0x50] sm:$0xff] %v2167_v43  ;;  %3043 = vtanh.f32 %v1982_v53  ;;  %v1984_v37 = vmul.f32 0.5, %v1853_v47 }
 0x37d   : > { %v3034_v48 = vpop.eup %3033  ;;  %2232 = vst [vmem:[%s3989_s24 + $0x58] sm:$0xff] %v2168_v50  ;;  %3045 = vtanh.f32 %v1983_v51 }
 0x37e   : > { %v3036_v62 = vpop.eup %3035  ;;  %v2105_v30 = vmul.f32 0.5, %v3034_v48  ;;  %3047 = vtanh.f32 %v1984_v37  ;;  %v1856_v36 = vpop.f32.mrb[40].mxu1 }
 0x37f   : > { %v3038_v17 = vpop.eup %3037  ;;  %v2106_v25 = vmul.f32 0.5, %v3036_v62  ;;  %v1857_v32 = vadd.f32 %v1856_v36, %v3971_v19  ;;  %v1858_v58 = vpop.f32.mrb[41].mxu1 }
 0x380   : > { %v3040_v40 = vpop.eup %3039  ;;  %v2169_v13 = vadd.f32 0.5, %v2105_v30  ;;  %v2107_v21 = vmul.f32 0.5, %v3038_v17  ;;  %v1859_v60 = vadd.f32 %v1858_v58, %v3973_v31  ;;  %v1860_v6 = vpop.f32.mrb[42].mxu1 }
 0x381   : > { %v2170_v23 = vadd.f32 0.5, %v2106_v25  ;;  %v2108_v49 = vmul.f32 0.5, %v3040_v40  ;;  %v1985_v61 = vmul.f32 0.5, %v1857_v32  ;;  %v1861_v35 = vadd.f32 %v1860_v6, %v3971_v19  ;;  %v1862_v0 = vpop.f32.mrb[43].mxu1 }
 0x382   : > { %2233 = vst [vmem:[%s3989_s24 + $0x60] sm:$0xff] %v2169_v13  ;;  %v2171_v15 = vadd.f32 0.5, %v2107_v21  ;;  %v1986_v44 = vmul.f32 0.5, %v1859_v60  ;;  %v1863_v55 = vadd.f32 %v1862_v0, %v3973_v31 }
 0x383   : > { %2234 = vst [vmem:[%s3989_s24 + $0x68] sm:$0xff] %v2170_v23  ;;  %v2172_v4 = vadd.f32 0.5, %v2108_v49  ;;  %3049 = vtanh.f32 %v1985_v61  ;;  %v1987_v8 = vmul.f32 0.5, %v1861_v35 }
 0x384   : > { %2235 = vst [vmem:[%s3989_s24 + $0x70] sm:$0xff] %v2171_v15  ;;  %3051 = vtanh.f32 %v1986_v44  ;;  %v1988_v20 = vmul.f32 0.5, %v1863_v55 }
 0x385   : > { %v3042_v9 = vpop.eup %3041  ;;  %2236 = vst [vmem:[%s3989_s24 + $0x78] sm:$0xff] %v2172_v4  ;;  %3053 = vtanh.f32 %v1987_v8 }
 0x386   : > { %v3044_v28 = vpop.eup %3043  ;;  %v2109_v22 = vmul.f32 0.5, %v3042_v9  ;;  %3055 = vtanh.f32 %v1988_v20  ;;  %v1866_v45 = vpop.f32.mrb[44].mxu1 }
 0x387   : > { %v3046_v42 = vpop.eup %3045  ;;  %v2110_v16 = vmul.f32 0.5, %v3044_v28  ;;  %v1867_v33 = vadd.f32 %v1866_v45, %v3971_v19  ;;  %v1868_v38 = vpop.f32.mrb[45].mxu1 }
 0x388   : > { %v3048_v14 = vpop.eup %3047  ;;  %v2173_v3 = vadd.f32 0.5, %v2109_v22  ;;  %v2111_v18 = vmul.f32 0.5, %v3046_v42  ;;  %v1869_v12 = vadd.f32 %v1868_v38, %v3973_v31  ;;  %v1870_v5 = vpop.f32.mrb[46].mxu1 }
 0x389   : > { %v2174_v56 = vadd.f32 0.5, %v2110_v16  ;;  %v2112_v2 = vmul.f32 0.5, %v3048_v14  ;;  %v1989_v10 = vmul.f32 0.5, %v1867_v33  ;;  %v1871_v11 = vadd.f32 %v1870_v5, %v3971_v19  ;;  %v1872_v24 = vpop.f32.mrb[47].mxu1 }
 0x38a   : > { %2237 = vst [vmem:[%s3989_s24 + $0x80] sm:$0xff] %v2173_v3  ;;  %v2175_v54 = vadd.f32 0.5, %v2111_v18  ;;  %v1990_v27 = vmul.f32 0.5, %v1869_v12  ;;  %v1873_v63 = vadd.f32 %v1872_v24, %v3973_v31 }
 0x38b   : > { %2238 = vst [vmem:[%s3989_s24 + $0x88] sm:$0xff] %v2174_v56  ;;  %v2176_v57 = vadd.f32 0.5, %v2112_v2  ;;  %3057 = vtanh.f32 %v1989_v10  ;;  %v1991_v1 = vmul.f32 0.5, %v1871_v11 }
 0x38c   : > { %2239 = vst [vmem:[%s3989_s24 + $0x90] sm:$0xff] %v2175_v54  ;;  %3059 = vtanh.f32 %v1990_v27  ;;  %v1992_v59 = vmul.f32 0.5, %v1873_v63 }
 0x38d   : > { %v3050_v7 = vpop.eup %3049  ;;  %2240 = vst [vmem:[%s3989_s24 + $0x98] sm:$0xff] %v2176_v57  ;;  %3061 = vtanh.f32 %v1991_v1 }
 0x38e   : > { %v3052_v29 = vpop.eup %3051  ;;  %v2113_v52 = vmul.f32 0.5, %v3050_v7  ;;  %3063 = vtanh.f32 %v1992_v59  ;;  %v1876_v26 = vpop.f32.mrb[48].mxu1 }
 0x38f   : > { %v3054_v39 = vpop.eup %3053  ;;  %v2114_v34 = vmul.f32 0.5, %v3052_v29  ;;  %v1877_v41 = vadd.f32 %v1876_v26, %v3971_v19  ;;  %v1878_v46 = vpop.f32.mrb[49].mxu1 }
 0x390   : > { %v3056_v43 = vpop.eup %3055  ;;  %v2177_v53 = vadd.f32 0.5, %v2113_v52  ;;  %v2115_v47 = vmul.f32 0.5, %v3054_v39  ;;  %v1879_v50 = vadd.f32 %v1878_v46, %v3973_v31  ;;  %v1880_v51 = vpop.f32.mrb[50].mxu1 }
 0x391   : > { %v2178_v37 = vadd.f32 0.5, %v2114_v34  ;;  %v2116_v48 = vmul.f32 0.5, %v3056_v43  ;;  %v1993_v62 = vmul.f32 0.5, %v1877_v41  ;;  %v1881_v30 = vadd.f32 %v1880_v51, %v3971_v19  ;;  %v1882_v36 = vpop.f32.mrb[51].mxu1 }
 0x392   : > { %2241 = vst [vmem:[%s3989_s24 + $0xa0] sm:$0xff] %v2177_v53  ;;  %v2179_v17 = vadd.f32 0.5, %v2115_v47  ;;  %v1994_v25 = vmul.f32 0.5, %v1879_v50  ;;  %v1883_v32 = vadd.f32 %v1882_v36, %v3973_v31 }
 0x393   : > { %2242 = vst [vmem:[%s3989_s24 + $0xa8] sm:$0xff] %v2178_v37  ;;  %v2180_v58 = vadd.f32 0.5, %v2116_v48  ;;  %3065 = vtanh.f32 %v1993_v62  ;;  %v1995_v40 = vmul.f32 0.5, %v1881_v30 }
 0x394   : > { %2243 = vst [vmem:[%s3989_s24 + $0xb0] sm:$0xff] %v2179_v17  ;;  %3067 = vtanh.f32 %v1994_v25  ;;  %v1996_v13 = vmul.f32 0.5, %v1883_v32 }
 0x395   : > { %v3058_v21 = vpop.eup %3057  ;;  %2244 = vst [vmem:[%s3989_s24 + $0xb8] sm:$0xff] %v2180_v58  ;;  %3069 = vtanh.f32 %v1995_v40 }
 0x396   : > { %v3060_v60 = vpop.eup %3059  ;;  %v2117_v6 = vmul.f32 0.5, %v3058_v21  ;;  %3071 = vtanh.f32 %v1996_v13 }
 0x397   : > { %v3062_v23 = vpop.eup %3061  ;;  %v2118_v49 = vmul.f32 0.5, %v3060_v60 }
 0x398   : > { %v3064_v61 = vpop.eup %3063  ;;  %v2181_v35 = vadd.f32 0.5, %v2117_v6  ;;  %v2119_v0 = vmul.f32 0.5, %v3062_v23 }
 0x399   : > { %v2182_v15 = vadd.f32 0.5, %v2118_v49  ;;  %v2120_v44 = vmul.f32 0.5, %v3064_v61 }
 0x39a   : > { %2245 = vst [vmem:[%s3989_s24 + $0xc0] sm:$0xff] %v2181_v35  ;;  %v2183_v55 = vadd.f32 0.5, %v2119_v0 }
 0x39b   : > { %2246 = vst [vmem:[%s3989_s24 + $0xc8] sm:$0xff] %v2182_v15  ;;  %v2184_v4 = vadd.f32 0.5, %v2120_v44 }
 0x39c   : > { %2247 = vst [vmem:[%s3989_s24 + $0xd0] sm:$0xff] %v2183_v55 }
 0x39d   : > { %v3066_v8 = vpop.eup %3065  ;;  %2248 = vst [vmem:[%s3989_s24 + $0xd8] sm:$0xff] %v2184_v4 }
 0x39e   : > { %v3068_v20 = vpop.eup %3067  ;;  %v2121_v9 = vmul.f32 0.5, %v3066_v8 }
 0x39f   : > { %v3070_v28 = vpop.eup %3069  ;;  %v2122_v22 = vmul.f32 0.5, %v3068_v20 }
 0x3a0   : > { %v3072_v45 = vpop.eup %3071  ;;  %v2185_v42 = vadd.f32 0.5, %v2121_v9  ;;  %v2123_v16 = vmul.f32 0.5, %v3070_v28 }
 0x3a1   : > { %v2186_v33 = vadd.f32 0.5, %v2122_v22  ;;  %v2124_v38 = vmul.f32 0.5, %v3072_v45 }
 0x3a2   : > { %2249 = vst [vmem:[%s3989_s24 + $0xe0] sm:$0xff] %v2185_v42  ;;  %v2187_v14 = vadd.f32 0.5, %v2123_v16 }
 0x3a3   : > { %2250 = vst [vmem:[%s3989_s24 + $0xe8] sm:$0xff] %v2186_v33  ;;  %v2188_v3 = vadd.f32 0.5, %v2124_v38 }
 0x3a4   : > { %2251 = vst [vmem:[%s3989_s24 + $0xf0] sm:$0xff] %v2187_v14 }
 0x3a5   : > { %2252 = vst [vmem:[%s3989_s24 + $0xf8] sm:$0xff] %v2188_v3 }
 0x3cf   : > { %v1886_v18 = vpop.f32.mrb[52].mxu1 }
 0x3d0   : > { %v1887_v12 = vadd.f32 %v1886_v18, %v3971_v19  ;;  %v1888_v5 = vpop.f32.mrb[53].mxu1 }
 0x3d1   : > { %v1889_v56 = vadd.f32 %v1888_v5, %v3973_v31  ;;  %v1890_v2 = vpop.f32.mrb[54].mxu1 }
 0x3d2   : > { %v1997_v10 = vmul.f32 0.5, %v1887_v12  ;;  %v1891_v11 = vadd.f32 %v1890_v2, %v3971_v19  ;;  %v1892_v24 = vpop.f32.mrb[55].mxu1 }
 0x3d3   : > { %v1998_v54 = vmul.f32 0.5, %v1889_v56  ;;  %v1893_v27 = vadd.f32 %v1892_v24, %v3973_v31 }
 0x3d4   : > { %3073 = vtanh.f32 %v1997_v10  ;;  %v1999_v63 = vmul.f32 0.5, %v1891_v11 }
 0x3d5   : > { %3075 = vtanh.f32 %v1998_v54  ;;  %v2000_v57 = vmul.f32 0.5, %v1893_v27 }
 0x3d6   : > { %3077 = vtanh.f32 %v1999_v63 }
 0x3d7   : > { %3079 = vtanh.f32 %v2000_v57  ;;  %v1896_v1 = vpop.f32.mrb[56].mxu1 }
 0x3d8   : > { %v1897_v59 = vadd.f32 %v1896_v1, %v3971_v19  ;;  %v1898_v7 = vpop.f32.mrb[57].mxu1 }
 0x3d9   : > { %v1899_v29 = vadd.f32 %v1898_v7, %v3973_v31  ;;  %v1900_v52 = vpop.f32.mrb[58].mxu1 }
 0x3da   : > { %v2001_v26 = vmul.f32 0.5, %v1897_v59  ;;  %v1901_v39 = vadd.f32 %v1900_v52, %v3971_v19  ;;  %v1902_v34 = vpop.f32.mrb[59].mxu1 }
 0x3db   : > { %v2002_v41 = vmul.f32 0.5, %v1899_v29  ;;  %v1903_v46 = vadd.f32 %v1902_v34, %v3973_v31 }
 0x3dc   : > { %3081 = vtanh.f32 %v2001_v26  ;;  %v2003_v43 = vmul.f32 0.5, %v1901_v39 }
 0x3dd   : > { %3083 = vtanh.f32 %v2002_v41  ;;  %v2004_v53 = vmul.f32 0.5, %v1903_v46 }
 0x3de   : > { %v3074_v47 = vpop.eup %3073  ;;  %3085 = vtanh.f32 %v2003_v43 }
 0x3df   : > { %v3076_v50 = vpop.eup %3075  ;;  %v2125_v51 = vmul.f32 0.5, %v3074_v47  ;;  %3087 = vtanh.f32 %v2004_v53  ;;  %v1906_v37 = vpop.f32.mrb[60].mxu1 }
 0x3e0   : > { %v3078_v48 = vpop.eup %3077  ;;  %v2126_v62 = vmul.f32 0.5, %v3076_v50  ;;  %v1907_v30 = vadd.f32 %v1906_v37, %v3971_v19  ;;  %v1908_v36 = vpop.f32.mrb[61].mxu1 }
 0x3e1   : > { %v3080_v17 = vpop.eup %3079  ;;  %v2189_v25 = vadd.f32 0.5, %v2125_v51  ;;  %v2127_v32 = vmul.f32 0.5, %v3078_v48  ;;  %v1909_v58 = vadd.f32 %v1908_v36, %v3973_v31  ;;  %v1910_v40 = vpop.f32.mrb[62].mxu1 }
 0x3e2   : > { %v2190_v13 = vadd.f32 0.5, %v2126_v62  ;;  %v2128_v21 = vmul.f32 0.5, %v3080_v17  ;;  %v2005_v60 = vmul.f32 0.5, %v1907_v30  ;;  %v1911_v6 = vadd.f32 %v1910_v40, %v3971_v19  ;;  %v1912_v23 = vpop.f32.mrb[63].mxu1 }
 0x3e3   : > { %2253 = vst [vmem:[%s3989_s24 + $0x100] sm:$0xff] %v2189_v25  ;;  %v2191_v49 = vadd.f32 0.5, %v2127_v32  ;;  %v2006_v61 = vmul.f32 0.5, %v1909_v58  ;;  %v1913_v35 = vadd.f32 %v1912_v23, %v3973_v31 }
 0x3e4   : > { %2254 = vst [vmem:[%s3989_s24 + $0x108] sm:$0xff] %v2190_v13  ;;  %v2192_v0 = vadd.f32 0.5, %v2128_v21  ;;  %3089 = vtanh.f32 %v2005_v60  ;;  %v2007_v15 = vmul.f32 0.5, %v1911_v6 }
 0x3e5   : > { %2255 = vst [vmem:[%s3989_s24 + $0x110] sm:$0xff] %v2191_v49  ;;  %3091 = vtanh.f32 %v2006_v61  ;;  %v2008_v44 = vmul.f32 0.5, %v1913_v35 }
 0x3e6   : > { %v3082_v55 = vpop.eup %3081  ;;  %2256 = vst [vmem:[%s3989_s24 + $0x118] sm:$0xff] %v2192_v0  ;;  %3093 = vtanh.f32 %v2007_v15 }
 0x3e7   : > { %v3084_v4 = vpop.eup %3083  ;;  %v2129_v8 = vmul.f32 0.5, %v3082_v55  ;;  %3095 = vtanh.f32 %v2008_v44  ;;  %v1916_v20 = vpop.f32.mrb[64].mxu1 }
 0x3e8   : > { %v3086_v9 = vpop.eup %3085  ;;  %v2130_v28 = vmul.f32 0.5, %v3084_v4  ;;  %v1917_v22 = vadd.f32 %v1916_v20, %v3971_v19  ;;  %v1918_v45 = vpop.f32.mrb[65].mxu1 }
 0x3e9   : > { %v3088_v42 = vpop.eup %3087  ;;  %v2193_v16 = vadd.f32 0.5, %v2129_v8  ;;  %v2131_v33 = vmul.f32 0.5, %v3086_v9  ;;  %v1919_v38 = vadd.f32 %v1918_v45, %v3973_v31  ;;  %v1920_v14 = vpop.f32.mrb[66].mxu1 }
 0x3ea   : > { %v2194_v3 = vadd.f32 0.5, %v2130_v28  ;;  %v2132_v18 = vmul.f32 0.5, %v3088_v42  ;;  %v2009_v12 = vmul.f32 0.5, %v1917_v22  ;;  %v1921_v5 = vadd.f32 %v1920_v14, %v3971_v19  ;;  %v1922_v56 = vpop.f32.mrb[67].mxu1 }
 0x3eb   : > { %2257 = vst [vmem:[%s3989_s24 + $0x120] sm:$0xff] %v2193_v16  ;;  %v2195_v2 = vadd.f32 0.5, %v2131_v33  ;;  %v2010_v10 = vmul.f32 0.5, %v1919_v38  ;;  %v1923_v11 = vadd.f32 %v1922_v56, %v3973_v31 }
 0x3ec   : > { %2258 = vst [vmem:[%s3989_s24 + $0x128] sm:$0xff] %v2194_v3  ;;  %v2196_v24 = vadd.f32 0.5, %v2132_v18  ;;  %3097 = vtanh.f32 %v2009_v12  ;;  %v2011_v54 = vmul.f32 0.5, %v1921_v5 }
 0x3ed   : > { %2259 = vst [vmem:[%s3989_s24 + $0x130] sm:$0xff] %v2195_v2  ;;  %3099 = vtanh.f32 %v2010_v10  ;;  %v2012_v27 = vmul.f32 0.5, %v1923_v11 }
 0x3ee   : > { %v3090_v63 = vpop.eup %3089  ;;  %2260 = vst [vmem:[%s3989_s24 + $0x138] sm:$0xff] %v2196_v24  ;;  %3101 = vtanh.f32 %v2011_v54 }
 0x3ef   : > { %v3092_v57 = vpop.eup %3091  ;;  %v2133_v1 = vmul.f32 0.5, %v3090_v63  ;;  %3103 = vtanh.f32 %v2012_v27  ;;  %v1926_v59 = vpop.f32.mrb[68].mxu1 }
 0x3f0   : > { %v3094_v7 = vpop.eup %3093  ;;  %v2134_v29 = vmul.f32 0.5, %v3092_v57  ;;  %v1927_v52 = vadd.f32 %v1926_v59, %v3971_v19  ;;  %v1928_v26 = vpop.f32.mrb[69].mxu1 }
 0x3f1   : > { %v3096_v39 = vpop.eup %3095  ;;  %v2197_v34 = vadd.f32 0.5, %v2133_v1  ;;  %v2135_v41 = vmul.f32 0.5, %v3094_v7  ;;  %v1929_v46 = vadd.f32 %v1928_v26, %v3973_v31  ;;  %v1930_v43 = vpop.f32.mrb[70].mxu1 }
 0x3f2   : > { %v2198_v53 = vadd.f32 0.5, %v2134_v29  ;;  %v2136_v47 = vmul.f32 0.5, %v3096_v39  ;;  %v2013_v50 = vmul.f32 0.5, %v1927_v52  ;;  %v1931_v51 = vadd.f32 %v1930_v43, %v3971_v19  ;;  %v1932_v37 = vpop.f32.mrb[71].mxu1 }
 0x3f3   : > { %2261 = vst [vmem:[%s3989_s24 + $0x140] sm:$0xff] %v2197_v34  ;;  %v2199_v48 = vadd.f32 0.5, %v2135_v41  ;;  %v2014_v62 = vmul.f32 0.5, %v1929_v46  ;;  %v1933_v30 = vadd.f32 %v1932_v37, %v3973_v31 }
 0x3f4   : > { %2262 = vst [vmem:[%s3989_s24 + $0x148] sm:$0xff] %v2198_v53  ;;  %v2200_v36 = vadd.f32 0.5, %v2136_v47  ;;  %3105 = vtanh.f32 %v2013_v50  ;;  %v2015_v17 = vmul.f32 0.5, %v1931_v51 }
 0x3f5   : > { %2263 = vst [vmem:[%s3989_s24 + $0x150] sm:$0xff] %v2199_v48  ;;  %3107 = vtanh.f32 %v2014_v62  ;;  %v2016_v25 = vmul.f32 0.5, %v1933_v30 }
 0x3f6   : > { %v3098_v32 = vpop.eup %3097  ;;  %2264 = vst [vmem:[%s3989_s24 + $0x158] sm:$0xff] %v2200_v36  ;;  %3109 = vtanh.f32 %v2015_v17 }
 0x3f7   : > { %v3100_v58 = vpop.eup %3099  ;;  %v2137_v40 = vmul.f32 0.5, %v3098_v32  ;;  %3111 = vtanh.f32 %v2016_v25  ;;  %v1936_v13 = vpop.f32.mrb[72].mxu1 }
 0x3f8   : > { %v3102_v21 = vpop.eup %3101  ;;  %v2138_v60 = vmul.f32 0.5, %v3100_v58  ;;  %v1937_v6 = vadd.f32 %v1936_v13, %v3971_v19  ;;  %v1938_v23 = vpop.f32.mrb[73].mxu1 }
 0x3f9   : > { %v3104_v49 = vpop.eup %3103  ;;  %v2201_v61 = vadd.f32 0.5, %v2137_v40  ;;  %v2139_v35 = vmul.f32 0.5, %v3102_v21  ;;  %v1939_v0 = vadd.f32 %v1938_v23, %v3973_v31  ;;  %v1940_v15 = vpop.f32.mrb[74].mxu1 }
 0x3fa   : > { %v2202_v44 = vadd.f32 0.5, %v2138_v60  ;;  %v2140_v55 = vmul.f32 0.5, %v3104_v49  ;;  %v2017_v4 = vmul.f32 0.5, %v1937_v6  ;;  %v1941_v8 = vadd.f32 %v1940_v15, %v3971_v19  ;;  %v1942_v20 = vpop.f32.mrb[75].mxu1 }
 0x3fb   : > { %2265 = vst [vmem:[%s3989_s24 + $0x160] sm:$0xff] %v2201_v61  ;;  %v2203_v9 = vadd.f32 0.5, %v2139_v35  ;;  %v2018_v28 = vmul.f32 0.5, %v1939_v0  ;;  %v1943_v22 = vadd.f32 %v1942_v20, %v3973_v31 }
 0x3fc   : > { %2266 = vst [vmem:[%s3989_s24 + $0x168] sm:$0xff] %v2202_v44  ;;  %v2204_v45 = vadd.f32 0.5, %v2140_v55  ;;  %3113 = vtanh.f32 %v2017_v4  ;;  %v2019_v42 = vmul.f32 0.5, %v1941_v8 }
 0x3fd   : > { %2267 = vst [vmem:[%s3989_s24 + $0x170] sm:$0xff] %v2203_v9  ;;  %3115 = vtanh.f32 %v2018_v28  ;;  %v2020_v16 = vmul.f32 0.5, %v1943_v22 }
 0x3fe   : > { %v3106_v33 = vpop.eup %3105  ;;  %2268 = vst [vmem:[%s3989_s24 + $0x178] sm:$0xff] %v2204_v45  ;;  %3117 = vtanh.f32 %v2019_v42 }
 0x3ff   : > { %v3108_v38 = vpop.eup %3107  ;;  %v2141_v14 = vmul.f32 0.5, %v3106_v33  ;;  %3119 = vtanh.f32 %v2020_v16  ;;  %v1946_v3 = vpop.f32.mrb[76].mxu1 }
 0x400   : > { %v3110_v18 = vpop.eup %3109  ;;  %v2142_v12 = vmul.f32 0.5, %v3108_v38  ;;  %v1947_v5 = vadd.f32 %v1946_v3, %v3971_v19  ;;  %v1948_v56 = vpop.f32.mrb[77].mxu1 }
 0x401   : > { %v3112_v2 = vpop.eup %3111  ;;  %v2205_v10 = vadd.f32 0.5, %v2141_v14  ;;  %v2143_v11 = vmul.f32 0.5, %v3110_v18  ;;  %v1949_v24 = vadd.f32 %v1948_v56, %v3973_v31  ;;  %v1950_v54 = vpop.f32.mrb[78].mxu1 }
 0x402   : > { %v2206_v27 = vadd.f32 0.5, %v2142_v12  ;;  %v2144_v63 = vmul.f32 0.5, %v3112_v2  ;;  %v2021_v57 = vmul.f32 0.5, %v1947_v5  ;;  %v1951_v1 = vadd.f32 %v1950_v54, %v3971_v19  ;;  %v1952_v59 = vpop.f32.mrb[79].mxu1 }
 0x403   : > { %2269 = vst [vmem:[%s3989_s24 + $0x180] sm:$0xff] %v2205_v10  ;;  %v2207_v7 = vadd.f32 0.5, %v2143_v11  ;;  %v2022_v29 = vmul.f32 0.5, %v1949_v24  ;;  %v1953_v52 = vadd.f32 %v1952_v59, %v3973_v31 }
 0x404   : > { %2270 = vst [vmem:[%s3989_s24 + $0x188] sm:$0xff] %v2206_v27  ;;  %v2208_v26 = vadd.f32 0.5, %v2144_v63  ;;  %3121 = vtanh.f32 %v2021_v57  ;;  %v2023_v39 = vmul.f32 0.5, %v1951_v1 }
 0x405   : > { %2271 = vst [vmem:[%s3989_s24 + $0x190] sm:$0xff] %v2207_v7  ;;  %3123 = vtanh.f32 %v2022_v29  ;;  %v2024_v34 = vmul.f32 0.5, %v1953_v52 }
 0x406   : > { %v3114_v41 = vpop.eup %3113  ;;  %2272 = vst [vmem:[%s3989_s24 + $0x198] sm:$0xff] %v2208_v26  ;;  %3125 = vtanh.f32 %v2023_v39 }
 0x407   : > { %v3116_v46 = vpop.eup %3115  ;;  %v2145_v43 = vmul.f32 0.5, %v3114_v41  ;;  %3127 = vtanh.f32 %v2024_v34  ;;  %v1956_v53 = vpop.f32.mrb[80].mxu1 }
 0x408   : > { %v3118_v47 = vpop.eup %3117  ;;  %v2146_v50 = vmul.f32 0.5, %v3116_v46  ;;  %v1957_v51 = vadd.f32 %v1956_v53, %v3971_v19  ;;  %v1958_v37 = vpop.f32.mrb[81].mxu1 }
 0x409   : > { %v3120_v48 = vpop.eup %3119  ;;  %v2209_v62 = vadd.f32 0.5, %v2145_v43  ;;  %v2147_v30 = vmul.f32 0.5, %v3118_v47  ;;  %v1959_v36 = vadd.f32 %v1958_v37, %v3973_v31  ;;  %v1960_v17 = vpop.f32.mrb[82].mxu1 }
 0x40a   : > { %v2210_v25 = vadd.f32 0.5, %v2146_v50  ;;  %v2148_v32 = vmul.f32 0.5, %v3120_v48  ;;  %v2025_v58 = vmul.f32 0.5, %v1957_v51  ;;  %v1961_v40 = vadd.f32 %v1960_v17, %v3971_v19  ;;  %v1962_v13 = vpop.f32.mrb[83].mxu1 }
 0x40b   : > { %2273 = vst [vmem:[%s3989_s24 + $0x1a0] sm:$0xff] %v2209_v62  ;;  %v2211_v21 = vadd.f32 0.5, %v2147_v30  ;;  %v2026_v60 = vmul.f32 0.5, %v1959_v36  ;;  %v1963_v6 = vadd.f32 %v1962_v13, %v3973_v31 }
 0x40c   : > { %2274 = vst [vmem:[%s3989_s24 + $0x1a8] sm:$0xff] %v2210_v25  ;;  %v2212_v23 = vadd.f32 0.5, %v2148_v32  ;;  %3129 = vtanh.f32 %v2025_v58  ;;  %v2027_v49 = vmul.f32 0.5, %v1961_v40 }
 0x40d   : > { %2275 = vst [vmem:[%s3989_s24 + $0x1b0] sm:$0xff] %v2211_v21  ;;  %3131 = vtanh.f32 %v2026_v60  ;;  %v2028_v61 = vmul.f32 0.5, %v1963_v6 }
 0x40e   : > { %v3122_v35 = vpop.eup %3121  ;;  %2276 = vst [vmem:[%s3989_s24 + $0x1b8] sm:$0xff] %v2212_v23  ;;  %3133 = vtanh.f32 %v2027_v49 }
 0x40f   : > { %v3124_v19 = vpop.eup %3123  ;;  %v2149_v0 = vmul.f32 0.5, %v3122_v35  ;;  %3135 = vtanh.f32 %v2028_v61 }
 0x410   : > { %v3126_v15 = vpop.eup %3125  ;;  %v2150_v44 = vmul.f32 0.5, %v3124_v19 }
 0x411   : > { %v3128_v31 = vpop.eup %3127  ;;  %v2213_v55 = vadd.f32 0.5, %v2149_v0  ;;  %v2151_v4 = vmul.f32 0.5, %v3126_v15 }
 0x412   : > { %v2214_v8 = vadd.f32 0.5, %v2150_v44  ;;  %v2152_v20 = vmul.f32 0.5, %v3128_v31 }
 0x413   : > { %2277 = vst [vmem:[%s3989_s24 + $0x1c0] sm:$0xff] %v2213_v55  ;;  %v2215_v9 = vadd.f32 0.5, %v2151_v4 }
 0x414   : > { %2278 = vst [vmem:[%s3989_s24 + $0x1c8] sm:$0xff] %v2214_v8  ;;  %v2216_v28 = vadd.f32 0.5, %v2152_v20 }
 0x415   : > { %2279 = vst [vmem:[%s3989_s24 + $0x1d0] sm:$0xff] %v2215_v9 }
 0x416   : > { %v3130_v22 = vpop.eup %3129  ;;  %2280 = vst [vmem:[%s3989_s24 + $0x1d8] sm:$0xff] %v2216_v28 }
 0x417   : > { %v3132_v45 = vpop.eup %3131  ;;  %v2153_v42 = vmul.f32 0.5, %v3130_v22 }
 0x418   : > { %v3134_v16 = vpop.eup %3133  ;;  %v2154_v33 = vmul.f32 0.5, %v3132_v45 }
 0x419   : > { %v3136_v38 = vpop.eup %3135  ;;  %v2217_v14 = vadd.f32 0.5, %v2153_v42  ;;  %v2155_v3 = vmul.f32 0.5, %v3134_v16 }
 0x41a   : > { %v2218_v18 = vadd.f32 0.5, %v2154_v33  ;;  %v2156_v12 = vmul.f32 0.5, %v3136_v38 }
 0x41b   : > { %2281 = vst [vmem:[%s3989_s24 + $0x1e0] sm:$0xff] %v2217_v14  ;;  %v2219_v5 = vadd.f32 0.5, %v2155_v3 }
 0x41c   : > { %2282 = vst [vmem:[%s3989_s24 + $0x1e8] sm:$0xff] %v2218_v18  ;;  %v2220_v56 = vadd.f32 0.5, %v2156_v12 }
 0x41d   : > { %2283 = vst [vmem:[%s3989_s24 + $0x1f0] sm:$0xff] %v2219_v5 }
 0x41e   : > { %2284 = vst [vmem:[%s3989_s24 + $0x1f8] sm:$0xff] %v2220_v56 }
 0x41f   : > { %3150 = shalt.err (!%p3147_p3)
}
 0x420   : > { %s3151_s22 = scalar_lea.hbm %s4110_s16, 8192  ;;  %s3155_s17 = scalar_lea.hbm %s4168_s8, 16384 }
 0x421   : > { %p3152_p4 = scmp.ne.s32.totalorder %s4110_s16, %s3151_s22  ;;  %p3156_p9 = scmp.lt.u32.totalorder %s4110_s16, %s4168_s8 }
 0x422   : > { %p3157_p10 = scmp.lt.u32.totalorder %s3155_s17, %s3151_s22  ;;  %p3159_p12 = scmp.lt.u32.totalorder %s3151_s22, %s4110_s16 }
 0x423   : > { %p3153_p7 = pnand %p3152_p4, %p3295_p5 }
 0x424   : > { %p3158_p11 = por %p3157_p10, %p3156_p9 }
 0x425   : > { %p3154_p8 = pneg %p3153_p7 }
 0x426   : > { %p3160_p13 = por %p3159_p12, %p3158_p11 }
 0x428   : > { %p3161_p0 = pnand %p3160_p13, %p3154_p8 }
 0x42a   : > { %3164 = shalt.err (!%p3161_p0)
}
 0x42b   : > { %s3205_s21 = smov 256   ;;  %s3206_s27 = smov 16  }
 0x42c   : > { %2763 = dma.vmem_to_hbm [thread:$0]  (%p3295_p5), %s4112_s28, 8192, %s4110_s16, %s4119_s13, %s3205_s21, %s3205_s21, %s3206_s27  }
 0x42d PF: > { %p2769_p1 = scmp.ge.s32.totalorder %s3199_s12, 2  ;;  %s2388_s25 = sand.u32 1, %s3187_s30  }
 0x42e   : > { %s2389_s26 = scalar_lea.sflag [#allocation3], %s2388_s25 }
 0x42f   : > { %p2766_p2 = pnand %p2769_p1, %p3299_p6 }
 0x431   : > { %3182 = dma.done.wait (!%p2766_p2), %s2389_s26, 8192  }
 0x432   : > { %3184 = vsyncadd (!%p2766_p2), %s2389_s26, 4294959104  ;;  %p20_p3 = scmp.ge.s32.totalorder %s3282_s15, 4   ;;  %s4172_s30 = smov %s3191_s10 }
 0x433   : > { %s4173_s10 = smov %s3195_s11  ;;  %s4174_s11 = smov %s3293_s18 }
 0x434   : > { %s4175_s12 = smov %s3282_s15  ;;  %22 = sbr.rel (!%p20_p3) target bundleno = 3 (0x3), region = 102 }
 0x43b   :  { %2402 = vsyncpa [#allocation3], 1 }
 0x43c   :  { %2404 = vsyncpa [#allocation3 + $0x1], 1 }

</bundles_post_ra>
